<compile_context>
chip_gen: v7x
topology: tpu7x:2x2x1
jax: 0.10.0
libtpu: 0.0.40
codegen_flags: <defaults>
</compile_context>

<pallas_src>
import functools

import jax
import jax.numpy as jnp
import numpy as np
from jax.experimental import pallas as pl
from jax.experimental.pallas import tpu as pltpu


def _sulayer_kernel(x_ref, *refs, bands, c_out, compute_dtype):
    """Fused per-band ConvTranspose2d([K,1],[s,1]) for one (batch, T-tile) step.

    x_ref : (1, Fr_total, C_in, T_BLK)     frequency-major, T-minor input block
    refs  : w_0..w_{nb-1}  (K_i*C_out, C_in)  tap-major packed weights
            b_0..b_{nb-1}  (C_out, 1)         biases
            o_ref          (1, Fr_out_total, C_out, T_BLK)
    bands : static tuple of (start, fr_in, stride, kernel, dist, out_len, out_off)
    """
    nb = len(bands)
    w_refs = refs[:nb]
    b_refs = refs[nb:2 * nb]
    o_ref = refs[2 * nb]
    c_in = x_ref.shape[2]
    tb = x_ref.shape[3]

    for i, (start, fr_in, stride, kernel, dist, out_len, out_off) in enumerate(bands):
        n_taps = kernel * c_out
        # (fr_in, C_in, T) band slice: leading-dim slicing only, no relayout.
        x_b = x_ref[0, start:start + fr_in, :, :].astype(compute_dtype)

        # Hot path: ONE batched MXU matmul ('bqk,bkd->bqd' form, T on lanes):
        #   y[fi, kf*C_out + co, t] = sum_ci W[ci, co, kf] * x[fi, ci, t]
        w_b = jnp.broadcast_to(w_refs[i][...][None], (fr_in, n_taps, c_in))
        y = jax.lax.dot_general(
            w_b, x_b,
            dimension_numbers=(((2,), (1,)), ((0,), (0,))),
            preferred_element_type=jnp.float32,
        )                                                    # (fr_in, K*C_out, T) f32

        # Transposed-conv tap placement, entirely at the value level (no scratch,
        # no zero-init, no read-modify-write):
        #   fo = fi*stride + kf  ->  (q, r) = (fi + kf//stride, kf % stride).
        # Group taps by residue r, shift along the LEADING freq axis and sum,
        # then interleave residues with a free leading-dim stack+reshape.
        n_q = fr_in + (kernel - 1) // stride
        residues = []
        for r in range(stride):
            acc = None
            a = 0
            while a * stride + r < kernel:
                kf = a * stride + r
                tap = y[:, kf * c_out:(kf + 1) * c_out, :]   # (fr_in, C_out, T)
                parts = []
                if a > 0:
                    parts.append(jnp.zeros((a, c_out, tb), jnp.float32))
                parts.append(tap)
                back = n_q - fr_in - a
                if back > 0:
                    parts.append(jnp.zeros((back, c_out, tb), jnp.float32))
                shifted = parts[0] if len(parts) == 1 else jnp.concatenate(parts, axis=0)
                acc = shifted if acc is None else acc + shifted
                a += 1
            if acc is None:   # stride > kernel: these rows stay bias-only
                acc = jnp.zeros((n_q, c_out, tb), jnp.float32)
            residues.append(acc)

        if stride > 1:
            stacked = jnp.concatenate([res[:, None, :, :] for res in residues], axis=1)
            band_full = stacked.reshape(n_q * stride, c_out, tb)   # free: leading dims only
        else:
            band_full = residues[0]

        # Trim to the requested origin length, fuse the bias add, cast once and
        # write this band with a single aligned, lane-dense slab store.
        bias = b_refs[i][...].astype(jnp.float32)                  # (C_out, 1)
        band = band_full[dist:dist + out_len] + bias               # (out_len, C_out, T)
        o_ref[0, out_off:out_off + out_len, :, :] = band.astype(o_ref.dtype)


def _pick_t_block(T):
    # Biggest lane-dense tile that divides T (production: sweep 128..512 against
    # the per-generation VMEM budget); tiny demo T falls back to a single block.
    for cand in (512, 256, 128):
        if T % cand == 0:
            return cand
    return T


def sulayer_forward(x, weights, biases, strides, kernels, lengths, origin_lengths,
                    *, use_bf16_mxu=False):
    """SUlayer forward.  x: NCHW [B, C_in, Fr, T] -> NCHW [B, C_out, sum(origin), T]."""
    B, C_in, Fr, T = x.shape
    C_out = weights[0].shape[1]
    nb = len(weights)
    assert nb == len(biases) == len(strides) == len(kernels), "band config mismatch"
    assert nb == len(lengths) == len(origin_lengths), "band count / lengths mismatch"
    assert sum(int(l) for l in lengths) == Fr, "sum(lengths) must equal Fr"

    compute_dtype = jnp.bfloat16 if use_bf16_mxu else x.dtype

    starts = np.concatenate([[0], np.cumsum(lengths)[:-1]]).astype(int).tolist()
    bands, w_packed, bias2d = [], [], []
    out_off = 0
    for i in range(nb):
        fr_in = int(lengths[i])
        K, s = int(kernels[i]), int(strides[i])
        fr_out = (fr_in - 1) * s + K
        olen = int(origin_lengths[i])
        # PyTorch reference uses abs(); if the upsampled band were shorter than
        # the target the concat shape would silently change -> be explicit.
        assert fr_out >= olen, f"band {i}: upsampled length {fr_out} < origin {olen}"
        dist = (fr_out - olen) // 2
        bands.append((starts[i], fr_in, s, K, dist, olen, out_off))
        out_off += olen
        # Tap-major packing: w_packed[kf*C_out + co, ci] = w[ci, co, kf].
        w_packed.append(jnp.transpose(weights[i], (2, 1, 0))
                        .reshape(K * C_out, C_in).astype(compute_dtype))
        bias2d.append(biases[i].reshape(C_out, 1).astype(jnp.float32))
    Fr_out_total = out_off

    t_blk = _pick_t_block(T)
    n_t = T // t_blk

    # Both host-side layout changes keep T as the minor dim (cheap XLA copies):
    # NCHW -> (B, Fr, C_in, T) in,  (B, Fr_out, C_out, T) -> NCHW out.
    x_k = jnp.transpose(x, (0, 2, 1, 3))

    itemsize = np.dtype(x.dtype).itemsize
    x_blk_bytes = Fr * max(C_in, 8) * t_blk * itemsize
    out_blk_bytes = Fr_out_total * max(C_out, 8) * t_blk * itemsize
    vmem_limit = int(min(64 * 2**20, max(32 * 2**20, 4 * (x_blk_bytes + out_blk_bytes))))

    kern = functools.partial(_sulayer_kernel, bands=tuple(bands), c_out=C_out,
                             compute_dtype=compute_dtype)
    out_k = pl.pallas_call(
        kern,
        out_shape=jax.ShapeDtypeStruct((B, Fr_out_total, C_out, T), x.dtype),
        grid=(B, n_t),
        in_specs=(
            [pl.BlockSpec((1, Fr, C_in, t_blk), lambda b, t: (b, 0, 0, t))]
            + [pl.BlockSpec(w.shape, lambda b, t: (0, 0)) for w in w_packed]
            + [pl.BlockSpec(bb.shape, lambda b, t: (0, 0)) for bb in bias2d]
        ),
        out_specs=pl.BlockSpec((1, Fr_out_total, C_out, t_blk), lambda b, t: (b, 0, 0, t)),
        compiler_params=pltpu.CompilerParams(
            dimension_semantics=("parallel", "parallel"),
            vmem_limit_bytes=vmem_limit,
        ),
    )(x_k, *w_packed, *bias2d)
    return jnp.transpose(out_k, (0, 2, 1, 3))                      # -> NCHW


class SUlayerPallas:
    """JAX/Pallas port of SUlayer. Parameters are created deterministically."""

    def __init__(self, channels_in, channels_out, band_configs, key, use_bf16_mxu=False):
        self.use_bf16_mxu = use_bf16_mxu
        self.strides, self.kernels, self.weights, self.biases = [], [], [], []
        keys = jax.random.split(key, 2 * len(band_configs))
        for i, (_, cfg) in enumerate(band_configs.items()):
            K, s = cfg["kernel"], cfg["stride"]
            bound = 1.0 / np.sqrt(channels_in * K)   # PyTorch-style uniform init
            w = jax.random.uniform(keys[2 * i], (channels_in, channels_out, K),
                                   minval=-bound, maxval=bound, dtype=jnp.float32)
            b = jax.random.uniform(keys[2 * i + 1], (channels_out,),
                                   minval=-bound, maxval=bound, dtype=jnp.float32)
            self.kernels.append(K)
            self.strides.append(s)
            self.weights.append(w)
            self.biases.append(b)

    def __call__(self, x, lengths, origin_lengths):
        return sulayer_forward(x, self.weights, self.biases, self.strides,
                               self.kernels, lengths, origin_lengths,
                               use_bf16_mxu=self.use_bf16_mxu)


# ------------------------- pure-JAX reference ---------------------------- #
def _ref_convtr_band(x_band, w, bias, stride):
    B, C_in, Fr, T = x_band.shape
    C_out, K = w.shape[1], w.shape[2]
    Fr_out = (Fr - 1) * stride + K
    out = jnp.zeros((B, C_out, Fr_out, T), jnp.float32) + bias[None, :, None, None]
    for fi in range(Fr):
        for kf in range(K):
            contrib = jnp.einsum("bct,cd->bdt", x_band[:, :, fi, :], w[:, :, kf])
            out = out.at[:, :, fi * stride + kf, :].add(contrib)
    return out


def _ref_sulayer(x, layer, lengths, origin_lengths):
    splits = [(0, lengths[0]),
              (lengths[0], lengths[0] + lengths[1]),
              (lengths[0] + lengths[1], x.shape[2])]
    outputs = []
    for idx, (start, end) in enumerate(splits):
        out = _ref_convtr_band(x[:, :, start:end, :], layer.weights[idx],
                               layer.biases[idx], layer.strides[idx])
        cur_fr = out.shape[2]
        dist = abs(origin_lengths[idx] - cur_fr) // 2
        outputs.append(out[:, :, dist:dist + origin_lengths[idx], :])
    return jnp.concatenate(outputs, axis=2)


if __name__ == "__main__":
    key = jax.random.PRNGKey(0)
    k_x, k_p = jax.random.split(key)

    # T chosen as 1024 so the demo exercises the lane-dense layout and the
    # two-step T grid (T_BLK = 512, grid = (B, 2)); everything else stays tiny.
    B, C_in, C_out, T = 2, 4, 6, 1024
    band_configs = {
        "low":  {"SR": 0.0, "stride": 1, "kernel": 3},
        "mid":  {"SR": 0.0, "stride": 2, "kernel": 2},
        "high": {"SR": 0.0, "stride": 4, "kernel": 4},
    }
    lengths = [6, 4, 3]                 # per-band lengths of the downsampled freq axis
    origin_lengths = [6, 8, 12]         # target lengths after upsample + trim
    Fr = sum(lengths)

    x = jax.random.normal(k_x, (B, C_in, Fr, T), dtype=jnp.float32)

    layer = SUlayerPallas(C_in, C_out, band_configs, k_p)
    out = jax.block_until_ready(layer(x, lengths, origin_lengths))

    ref = _ref_sulayer(x, layer, lengths, origin_lengths)
    assert out.shape == (B, C_out, sum(origin_lengths), T), out.shape
    np.testing.assert_allclose(np.asarray(out), np.asarray(ref), rtol=1e-4, atol=1e-4)

    # Review suggestion: bf16 MXU operands (f32 accumulation).  Same kernel,
    # only the operand dtype changes; checked with a bf16-appropriate tolerance.
    layer_bf16 = SUlayerPallas(C_in, C_out, band_configs, k_p, use_bf16_mxu=True)
    out_bf16 = jax.block_until_ready(layer_bf16(x, lengths, origin_lengths))
    np.testing.assert_allclose(np.asarray(out_bf16), np.asarray(ref), rtol=1e-1, atol=1e-1)

    print("KERNEL_OK")
</pallas_src>

<mosaic_0001>
module attributes {stable_mosaic.version = 11 : i64} {
  func.func @_sulayer_kernel(%arg0: i32, %arg1: i32, %arg2: memref<1x13x4x512xf32, #tpu.memory_space<vmem>>, %arg3: memref<18x4xf32, #tpu.memory_space<vmem>>, %arg4: memref<12x4xf32, #tpu.memory_space<vmem>>, %arg5: memref<24x4xf32, #tpu.memory_space<vmem>>, %arg6: memref<6x1xf32, #tpu.memory_space<vmem>>, %arg7: memref<6x1xf32, #tpu.memory_space<vmem>>, %arg8: memref<6x1xf32, #tpu.memory_space<vmem>>, %arg9: memref<1x26x6x512xf32, #tpu.memory_space<vmem>>) attributes {dimension_semantics = [#tpu.dimension_semantics<parallel>, #tpu.dimension_semantics<parallel>], iteration_bounds = array<i64: 2, 2>, scalar_prefetch = 0 : i64, scratch_operands = 0 : i64, tpu.core_type = #tpu.core_type<tc>, window_params = [{transform_indices = @transform_0, window_bounds = array<i64: 1, 13, 4, 512>}, {pipeline_mode = #tpu.pipeline_mode<synchronous>, transform_indices = @transform_1, window_bounds = array<i64: 18, 4>}, {pipeline_mode = #tpu.pipeline_mode<synchronous>, transform_indices = @transform_2, window_bounds = array<i64: 12, 4>}, {pipeline_mode = #tpu.pipeline_mode<synchronous>, transform_indices = @transform_3, window_bounds = array<i64: 24, 4>}, {pipeline_mode = #tpu.pipeline_mode<synchronous>, transform_indices = @transform_4, window_bounds = array<i64: 6, 1>}, {pipeline_mode = #tpu.pipeline_mode<synchronous>, transform_indices = @transform_5, window_bounds = array<i64: 6, 1>}, {pipeline_mode = #tpu.pipeline_mode<synchronous>, transform_indices = @transform_6, window_bounds = array<i64: 6, 1>}, {transform_indices = @transform_7, window_bounds = array<i64: 1, 26, 6, 512>}]} {
    %c0 = arith.constant 0 : index
    %c0_0 = arith.constant 0 : index
    %c0_1 = arith.constant 0 : index
    %c0_2 = arith.constant 0 : index
    %0 = vector.load %arg2[%c0, %c0_0, %c0_1, %c0_2] : memref<1x13x4x512xf32, #tpu.memory_space<vmem>>, vector<1x6x4x512xf32>
    %1 = vector.shape_cast %0 : vector<1x6x4x512xf32> to vector<6x4x512xf32>
    %c0_3 = arith.constant 0 : index
    %c0_4 = arith.constant 0 : index
    %2 = vector.load %arg3[%c0_3, %c0_4] : memref<18x4xf32, #tpu.memory_space<vmem>>, vector<18x4xf32>
    %3 = vector.shape_cast %2 : vector<18x4xf32> to vector<1x18x4xf32>
    %4 = vector.shape_cast %3 : vector<1x18x4xf32> to vector<1x18x4xf32>
    %5 = vector.broadcast %4 : vector<1x18x4xf32> to vector<6x18x4xf32>
    %cst = arith.constant dense<0.000000e+00> : vector<6x18x512xf32>
    %6 = tpu.matmul %5, %1, %cst {dimension_numbers = #tpu.dot_dimension_numbers<[2], [1], [1], [2], [0, 0, 0, 1, 1, 2], [0], [0]>} : vector<6x18x4xf32>, vector<6x4x512xf32>, vector<6x18x512xf32> -> vector<6x18x512xf32>
    %7 = vector.extract_strided_slice %6 {offsets = [0, 0, 0], sizes = [6, 6, 512], strides = [1, 1, 1]} : vector<6x18x512xf32> to vector<6x6x512xf32>
    %cst_5 = arith.constant 0.000000e+00 : f32
    %8 = vector.broadcast %cst_5 : f32 to vector<2x6x512xf32>
    %9 = tpu.concatenate %7, %8 in 0 : vector<6x6x512xf32>, vector<2x6x512xf32> -> vector<8x6x512xf32>
    %10 = vector.extract_strided_slice %6 {offsets = [0, 6, 0], sizes = [6, 6, 512], strides = [1, 1, 1]} : vector<6x18x512xf32> to vector<6x6x512xf32>
    %cst_6 = arith.constant 0.000000e+00 : f32
    %11 = vector.broadcast %cst_6 : f32 to vector<1x6x512xf32>
    %cst_7 = arith.constant 0.000000e+00 : f32
    %12 = vector.broadcast %cst_7 : f32 to vector<1x6x512xf32>
    %13 = tpu.concatenate %11, %10, %12 in 0 : vector<1x6x512xf32>, vector<6x6x512xf32>, vector<1x6x512xf32> -> vector<8x6x512xf32>
    %14 = arith.addf %9, %13 : vector<8x6x512xf32>
    %15 = vector.extract_strided_slice %6 {offsets = [0, 12, 0], sizes = [6, 6, 512], strides = [1, 1, 1]} : vector<6x18x512xf32> to vector<6x6x512xf32>
    %cst_8 = arith.constant 0.000000e+00 : f32
    %16 = vector.broadcast %cst_8 : f32 to vector<2x6x512xf32>
    %17 = tpu.concatenate %16, %15 in 0 : vector<2x6x512xf32>, vector<6x6x512xf32> -> vector<8x6x512xf32>
    %18 = arith.addf %14, %17 : vector<8x6x512xf32>
    %c0_9 = arith.constant 0 : index
    %c0_10 = arith.constant 0 : index
    %19 = vector.load %arg6[%c0_9, %c0_10] : memref<6x1xf32, #tpu.memory_space<vmem>>, vector<6x1xf32>
    %20 = vector.extract_strided_slice %18 {offsets = [1, 0, 0], sizes = [6, 6, 512], strides = [1, 1, 1]} : vector<8x6x512xf32> to vector<6x6x512xf32>
    %21 = vector.shape_cast %19 : vector<6x1xf32> to vector<1x6x1xf32>
    %22 = vector.broadcast %21 : vector<1x6x1xf32> to vector<6x6x512xf32>
    %23 = arith.addf %20, %22 : vector<6x6x512xf32>
    %c0_11 = arith.constant 0 : index
    %c0_12 = arith.constant 0 : index
    %c0_13 = arith.constant 0 : index
    %c0_14 = arith.constant 0 : index
    %24 = vector.load %arg9[%c0_11, %c0_12, %c0_13, %c0_14] : memref<1x26x6x512xf32, #tpu.memory_space<vmem>>, vector<1x6x6x512xf32>
    %25 = vector.shape_cast %24 : vector<1x6x6x512xf32> to vector<6x6x512xf32>
    %26 = vector.shape_cast %23 : vector<6x6x512xf32> to vector<1x6x6x512xf32>
    tpu.vector_store %arg9[%c0_11, %c0_12, %c0_13, %c0_14], %26 {strides = array<i32>} : memref<1x26x6x512xf32, #tpu.memory_space<vmem>>, vector<1x6x6x512xf32>,
    %c0_15 = arith.constant 0 : index
    %c6 = arith.constant 6 : index
    %c0_16 = arith.constant 0 : index
    %c0_17 = arith.constant 0 : index
    %27 = vector.load %arg2[%c0_15, %c6, %c0_16, %c0_17] : memref<1x13x4x512xf32, #tpu.memory_space<vmem>>, vector<1x4x4x512xf32>
    %28 = vector.shape_cast %27 : vector<1x4x4x512xf32> to vector<4x4x512xf32>
    %c0_18 = arith.constant 0 : index
    %c0_19 = arith.constant 0 : index
    %29 = vector.load %arg4[%c0_18, %c0_19] : memref<12x4xf32, #tpu.memory_space<vmem>>, vector<12x4xf32>
    %30 = vector.shape_cast %29 : vector<12x4xf32> to vector<1x12x4xf32>
    %31 = vector.shape_cast %30 : vector<1x12x4xf32> to vector<1x12x4xf32>
    %32 = vector.broadcast %31 : vector<1x12x4xf32> to vector<4x12x4xf32>
    %cst_20 = arith.constant dense<0.000000e+00> : vector<4x12x512xf32>
    %33 = tpu.matmul %32, %28, %cst_20 {dimension_numbers = #tpu.dot_dimension_numbers<[2], [1], [1], [2], [0, 0, 0, 1, 1, 2], [0], [0]>} : vector<4x12x4xf32>, vector<4x4x512xf32>, vector<4x12x512xf32> -> vector<4x12x512xf32>
    %34 = vector.extract_strided_slice %33 {offsets = [0, 0, 0], sizes = [4, 6, 512], strides = [1, 1, 1]} : vector<4x12x512xf32> to vector<4x6x512xf32>
    %35 = vector.extract_strided_slice %33 {offsets = [0, 6, 0], sizes = [4, 6, 512], strides = [1, 1, 1]} : vector<4x12x512xf32> to vector<4x6x512xf32>
    %36 = vector.shape_cast %34 : vector<4x6x512xf32> to vector<4x1x6x512xf32>
    %37 = vector.shape_cast %35 : vector<4x6x512xf32> to vector<4x1x6x512xf32>
    %38 = tpu.concatenate %36, %37 in 1 : vector<4x1x6x512xf32>, vector<4x1x6x512xf32> -> vector<4x2x6x512xf32>
    %39 = vector.shape_cast %38 : vector<4x2x6x512xf32> to vector<8x6x512xf32>
    %c0_21 = arith.constant 0 : index
    %c0_22 = arith.constant 0 : index
    %40 = vector.load %arg7[%c0_21, %c0_22] : memref<6x1xf32, #tpu.memory_space<vmem>>, vector<6x1xf32>
    %41 = vector.shape_cast %40 : vector<6x1xf32> to vector<1x6x1xf32>
    %42 = vector.broadcast %41 : vector<1x6x1xf32> to vector<8x6x512xf32>
    %43 = arith.addf %39, %42 : vector<8x6x512xf32>
    %c0_23 = arith.constant 0 : index
    %c6_24 = arith.constant 6 : index
    %c0_25 = arith.constant 0 : index
    %c0_26 = arith.constant 0 : index
    %44 = vector.load %arg9[%c0_23, %c6_24, %c0_25, %c0_26] : memref<1x26x6x512xf32, #tpu.memory_space<vmem>>, vector<1x8x6x512xf32>
    %45 = vector.shape_cast %44 : vector<1x8x6x512xf32> to vector<8x6x512xf32>
    %46 = vector.shape_cast %43 : vector<8x6x512xf32> to vector<1x8x6x512xf32>
    tpu.vector_store %arg9[%c0_23, %c6_24, %c0_25, %c0_26], %46 {strides = array<i32>} : memref<1x26x6x512xf32, #tpu.memory_space<vmem>>, vector<1x8x6x512xf32>,
    %c0_27 = arith.constant 0 : index
    %c10 = arith.constant 10 : index
    %c0_28 = arith.constant 0 : index
    %c0_29 = arith.constant 0 : index
    %47 = vector.load %arg2[%c0_27, %c10, %c0_28, %c0_29] : memref<1x13x4x512xf32, #tpu.memory_space<vmem>>, vector<1x3x4x512xf32>
    %48 = vector.shape_cast %47 : vector<1x3x4x512xf32> to vector<3x4x512xf32>
    %c0_30 = arith.constant 0 : index
    %c0_31 = arith.constant 0 : index
    %49 = vector.load %arg5[%c0_30, %c0_31] : memref<24x4xf32, #tpu.memory_space<vmem>>, vector<24x4xf32>
    %50 = vector.shape_cast %49 : vector<24x4xf32> to vector<1x24x4xf32>
    %51 = vector.shape_cast %50 : vector<1x24x4xf32> to vector<1x24x4xf32>
    %52 = vector.broadcast %51 : vector<1x24x4xf32> to vector<3x24x4xf32>
    %cst_32 = arith.constant dense<0.000000e+00> : vector<3x24x512xf32>
    %53 = tpu.matmul %52, %48, %cst_32 {dimension_numbers = #tpu.dot_dimension_numbers<[2], [1], [1], [2], [0, 0, 0, 1, 1, 2], [0], [0]>} : vector<3x24x4xf32>, vector<3x4x512xf32>, vector<3x24x512xf32> -> vector<3x24x512xf32>
    %54 = vector.extract_strided_slice %53 {offsets = [0, 0, 0], sizes = [3, 6, 512], strides = [1, 1, 1]} : vector<3x24x512xf32> to vector<3x6x512xf32>
    %55 = vector.extract_strided_slice %53 {offsets = [0, 6, 0], sizes = [3, 6, 512], strides = [1, 1, 1]} : vector<3x24x512xf32> to vector<3x6x512xf32>
    %56 = vector.extract_strided_slice %53 {offsets = [0, 12, 0], sizes = [3, 6, 512], strides = [1, 1, 1]} : vector<3x24x512xf32> to vector<3x6x512xf32>
    %57 = vector.extract_strided_slice %53 {offsets = [0, 18, 0], sizes = [3, 6, 512], strides = [1, 1, 1]} : vector<3x24x512xf32> to vector<3x6x512xf32>
    %58 = vector.shape_cast %54 : vector<3x6x512xf32> to vector<3x1x6x512xf32>
    %59 = vector.shape_cast %55 : vector<3x6x512xf32> to vector<3x1x6x512xf32>
    %60 = vector.shape_cast %56 : vector<3x6x512xf32> to vector<3x1x6x512xf32>
    %61 = vector.shape_cast %57 : vector<3x6x512xf32> to vector<3x1x6x512xf32>
    %62 = tpu.concatenate %58, %59, %60, %61 in 1 : vector<3x1x6x512xf32>, vector<3x1x6x512xf32>, vector<3x1x6x512xf32>, vector<3x1x6x512xf32> -> vector<3x4x6x512xf32>
    %63 = vector.shape_cast %62 : vector<3x4x6x512xf32> to vector<12x6x512xf32>
    %c0_33 = arith.constant 0 : index
    %c0_34 = arith.constant 0 : index
    %64 = vector.load %arg8[%c0_33, %c0_34] : memref<6x1xf32, #tpu.memory_space<vmem>>, vector<6x1xf32>
    %65 = vector.shape_cast %64 : vector<6x1xf32> to vector<1x6x1xf32>
    %66 = vector.broadcast %65 : vector<1x6x1xf32> to vector<12x6x512xf32>
    %67 = arith.addf %63, %66 : vector<12x6x512xf32>
    %c0_35 = arith.constant 0 : index
    %c14 = arith.constant 14 : index
    %c0_36 = arith.constant 0 : index
    %c0_37 = arith.constant 0 : index
    %68 = vector.load %arg9[%c0_35, %c14, %c0_36, %c0_37] : memref<1x26x6x512xf32, #tpu.memory_space<vmem>>, vector<1x12x6x512xf32>
    %69 = vector.shape_cast %68 : vector<1x12x6x512xf32> to vector<12x6x512xf32>
    %70 = vector.shape_cast %67 : vector<12x6x512xf32> to vector<1x12x6x512xf32>
    tpu.vector_store %arg9[%c0_35, %c14, %c0_36, %c0_37], %70 {strides = array<i32>} : memref<1x26x6x512xf32, #tpu.memory_space<vmem>>, vector<1x12x6x512xf32>,
    return
  }
  func.func @transform_0(%arg0: i32, %arg1: i32) -> (i32, i32, i32, i32) {
    %c0_i32 = arith.constant 0 : i32
    %c0_i32_0 = arith.constant 0 : i32
    %c0_i32_1 = arith.constant 0 : i32
    return %arg0, %c0_i32, %c0_i32_0, %arg1 : i32, i32, i32, i32
  }
  func.func @transform_1(%arg0: i32, %arg1: i32) -> (i32, i32) {
    %c0_i32 = arith.constant 0 : i32
    %c0_i32_0 = arith.constant 0 : i32
    %c0_i32_1 = arith.constant 0 : i32
    return %c0_i32, %c0_i32_0 : i32, i32
  }
  func.func @transform_2(%arg0: i32, %arg1: i32) -> (i32, i32) {
    %c0_i32 = arith.constant 0 : i32
    %c0_i32_0 = arith.constant 0 : i32
    %c0_i32_1 = arith.constant 0 : i32
    return %c0_i32, %c0_i32_0 : i32, i32
  }
  func.func @transform_3(%arg0: i32, %arg1: i32) -> (i32, i32) {
    %c0_i32 = arith.constant 0 : i32
    %c0_i32_0 = arith.constant 0 : i32
    %c0_i32_1 = arith.constant 0 : i32
    return %c0_i32, %c0_i32_0 : i32, i32
  }
  func.func @transform_4(%arg0: i32, %arg1: i32) -> (i32, i32) {
    %c0_i32 = arith.constant 0 : i32
    %c0_i32_0 = arith.constant 0 : i32
    %c0_i32_1 = arith.constant 0 : i32
    return %c0_i32, %c0_i32_0 : i32, i32
  }
  func.func @transform_5(%arg0: i32, %arg1: i32) -> (i32, i32) {
    %c0_i32 = arith.constant 0 : i32
    %c0_i32_0 = arith.constant 0 : i32
    %c0_i32_1 = arith.constant 0 : i32
    return %c0_i32, %c0_i32_0 : i32, i32
  }
  func.func @transform_6(%arg0: i32, %arg1: i32) -> (i32, i32) {
    %c0_i32 = arith.constant 0 : i32
    %c0_i32_0 = arith.constant 0 : i32
    %c0_i32_1 = arith.constant 0 : i32
    return %c0_i32, %c0_i32_0 : i32, i32
  }
  func.func @transform_7(%arg0: i32, %arg1: i32) -> (i32, i32, i32, i32) {
    %c0_i32 = arith.constant 0 : i32
    %c0_i32_0 = arith.constant 0 : i32
    %c0_i32_1 = arith.constant 0 : i32
    return %arg0, %c0_i32, %c0_i32_0, %arg1 : i32, i32, i32, i32
  }
}

</mosaic_0001>

<bundles_post_ra>
// kernel: tpu_custom_call.1
= control target key start
LH: loop header
LB: loop body
LE: loop exit
PB: predicated region body
PF: predicated region fallthrough
CT: control target
= control target key end

     0   :  { %12 = vsyncpa [#allocation3], 0  ;;  %s5197_s0 = inlined_call_operand.hbm [shape: f32[2,13,4,1024], index: 0, kind: input, shape index: {}]   ;;  %s5198_s1 = inlined_call_operand.vmem [shape: f32[18,4], index: 1, kind: input, shape index: {}]   ;;  %s5199_s2 = inlined_call_operand.vmem [shape: f32[12,4], index: 2, kind: input, shape index: {}]   ;;  %s5200_s3 = inlined_call_operand.vmem [shape: f32[24,4], index: 3, kind: input, shape index: {}]   ;;  %s5201_s4 = inlined_call_operand.vmem [shape: f32[6,1], index: 4, kind: input, shape index: {}]   ;;  %s5202_s5 = inlined_call_operand.vmem [shape: f32[6,1], index: 5, kind: input, shape index: {}]   ;;  %s5203_s6 = inlined_call_operand.vmem [shape: f32[6,1], index: 6, kind: input, shape index: {}]   ;;  %s5204_s7 = inlined_call_operand.vmem [shape: f32[2,26,6,1024], index: 7, kind: output, shape index: {}]  }
   0x1   :  { %14 = vsyncpa [#allocation3 + $0x1], 0  ;;  %s4204_s24 = smov 0   ;;  %s4206_s25 = smov 0  }
   0x2   :  { %s4208_s26 = smov 0   ;;  %s4210_s27 = smov 0  }
   0x3   :  { %s4212_s28 = smov 0   ;;  %s4214_s29 = smov 0  }
   0x4   :  { %s4216_s30 = smov 0   ;;  %s4218_s8 = smov 0  }
   0x5 LB: > { %5208 = sst [smem:[#allocation6_spill]] %s4152_s30  ;;  %s3724_s9 = sadd.s32 4294967295, %s4156_s8   ;;  %s4156_s8 = sphi %s4218_s8, %s20_s8   ;;  %s4152_s30 = sphi %s4216_s30, %s5218_s30   ;;  %s4148_s29 = sphi %s4214_s29, %s5223_s29   ;;  %s4144_s28 = sphi %s4212_s28, %s5216_s28   ;;  %s4140_s27 = sphi %s4210_s27, %s5222_s27   ;;  %s4136_s26 = sphi %s4208_s26, %s5221_s26   ;;  %s4132_s25 = sphi %s4206_s25, %s5220_s25   ;;  %s4128_s24 = sphi %s4204_s24, %s5219_s24  }
   0x6   : > { %s29_s10 = sadd.s32 1, %s4148_s29  ;;  %s32_s11 = sadd.s32 1, %s4152_s30 }
   0x7   : > { %p30_p0 = scmp.ge.s32.totalorder %s29_s10, 2  ;;  %s41_s12 = sadd.s32 1, %s4136_s26 }
   0x8   : > { %p48_p1 = scmp.ne.s32.totalorder %s4136_s26, %s4132_s25  ;;  %p49_p2 = scmp.eq.s32.totalorder %s4156_s8, 0 }
   0x9   : > { %s5225_s10 = smov (%p30_p0, %s29_s10), 0  ;;  %s5227_s11 = smov (!%p30_p0, %s32_s11), %s4152_s30 }
   0xa   : > { %5209 = sst [smem:[#allocation7_spill]] %s5225_s10  ;;  %s37_s13 = ssub.s32 %s4148_s29, %s5225_s10 }
   0xb   : > { %p34_p3 = scmp.ge.s32.totalorder %s5227_s11, 2  ;;  %p54_p4 = scmp.ne.s32.totalorder %s4132_s25, %s4128_s24 }
   0xc   : > { %p4258_p5 = por %p49_p2, %p48_p1  ;;  %p55_p6 = scmp.eq.s32.totalorder %s3724_s9, 0 }
   0xd   : > { %s5229_s11 = smov (%p34_p3, %s5227_s11), 0  ;;  %p206_p8 = scmp.eq.s32.totalorder %s3724_s9, 3 }
   0xe   : > { %5211 = sst [smem:[#allocation8_spill]] %s5229_s11  ;;  %p4264_p7 = por %p55_p6, %p54_p4 }
   0xf   : > { %s36_s16 = ssub.s32 %s4152_s30, %s5229_s11  ;;  %p4273_p9 = por %p206_p8, %p48_p1 }
  0x10   : > { %s38_s17 = sor.u32 %s37_s13, %s36_s16  ;;  %p3962_p11 = scmp.lt.s32.totalorder %s4156_s8, 4 }
  0x11   : > { %s5213_s18 = scalar_select %p4273_p9, 1, 0 }
  0x12   : > { %p39_p10 = scmp.eq.s32.totalorder %s38_s17, 0  ;;  %s250_s19 = sand.u32 1, %s4136_s26  }
  0x13   : > { %s3728_s20 = sshll.u32 %s4148_s29, 2  ;;  %s3951_s22 = smul.u32 208, %s250_s19 }
  0x14   : > { %s4281_s21 = scalar_select %p39_p10, %s4136_s26, %s41_s12  }
  0x15   : > { %s3952_s23 = smul.u32 104, %s4152_s30  ;;  %p4286_p12 = pnand %p3962_p11, %p4258_p5 }
  0x16   : > { %s254_s13 = scalar_lea.vmem [#allocation2], %s3951_s22  ;;  %s4297_s14 = scalar_lea.sflag [#allocation3], %s250_s19 }
  0x17   : > { %s260_s9 = sadd.s32 %s3952_s23, %s3728_s20  ;;  %s263_s16 = sshll.u32 %s254_s13, 4  ;;  %s4290_s16 = int_to_ptr.vmem [resolvable:$true] %s263_s16 }
  0x18   : > { %s3729_s11 = sshll.u32 %s260_s9, 6  ;;  %p4062_p0 = pneg %p4286_p12 }
  0x19   : > { %s4295_s12 = scalar_lea.hbm %s5197_s0, %s3729_s11  ;;  %s4065_s10 = scalar_lea.hbm %s5197_s0, 13312 }
  0x1a   : > { %s4060_s30 = scalar_lea.hbm %s4295_s12, 3328  ;;  %p4066_p3 = scmp.lt.u32.totalorder %s4295_s12, %s5197_s0 }
  0x1b   : > { %p4061_p13 = scmp.ne.s32.totalorder %s4295_s12, %s4060_s30  ;;  %p4067_p4 = scmp.lt.u32.totalorder %s4065_s10, %s4060_s30 }
  0x1c   : > { %p4069_p6 = scmp.lt.u32.totalorder %s4060_s30, %s4295_s12 }
  0x1d   : > { %p4063_p1 = pnand %p4062_p0, %p4061_p13  ;;  %p4068_p5 = por %p4067_p4, %p4066_p3 }
  0x1f   : > { %p4064_p2 = pneg %p4063_p1  ;;  %p4070_p8 = por %p4069_p6, %p4068_p5 }
  0x21   : > { %p4071_p10 = pnand %p4070_p8, %p4064_p2 }
  0x23   : > { %4074 = shalt.err (!%p4071_p10)
}
  0x24   : > { %s4075_s19 = scalar_lea.vmem %s4290_s16, 3328  ;;  %s4158_s9 = smov [#allocation2]  }
  0x25   : > { %p4076_p11 = scmp.ne.s32.totalorder %s4290_s16, %s4075_s19  ;;  %s4080_s13 = sshll.u32 %s4158_s9, 4  ;;  %s4081_s13 = int_to_ptr.vmem [resolvable:$false] %s4080_s13 }
  0x26   : > { %s4082_s17 = scalar_lea.vmem %s4081_s13, 6656  ;;  %p4083_p9 = scmp.lt.s32.totalorder %s4290_s16, %s4081_s13 }
  0x27   : > { %p4078_p13 = pnand %p4076_p11, %p4062_p0  ;;  %p4084_p3 = scmp.lt.s32.totalorder %s4082_s17, %s4075_s19 }
  0x29   : > { %p4079_p1 = pneg %p4078_p13  ;;  %p4085_p4 = por %p4084_p3, %p4083_p9 }
  0x2b   : > { %p4086_p5 = pnand %p4085_p4, %p4079_p1 }
  0x2d   : > { %4089 = shalt.err (!%p4086_p5)
}
  0x2e   : > { %s4159_s30 = smov 512   ;;  %s4160_s20 = smov 256  }
  0x2f   : > { %s4161_s22 = smov 16   ;;  %p3730_p0 = scmp.ge.s32.totalorder %s4156_s8, 1 }
  0x30   : > { %3961 = dma.hbm_to_vmem [thread:$0]  (!%p4286_p12), %s4295_s12, 3328, %s4290_s16, %s4297_s14, %s4159_s30, %s4160_s20, %s4161_s22  }
  0x31   : > { %p271_p2 = scmp.lt.s32.totalorder %s4156_s8, 5 }
  0x33   : > { %p272_p6 = pnand %p3730_p0, %p271_p2 }
  0x34   : > { %s4328_s10 = sand.u32 (!%p272_p6), 1, %s4132_s25  }
  0x35   : > { %275 = sbr.rel (%p272_p6) target bundleno = 476 (0x1dc), region = 48  ;;  %s278_s23 = scalar_lea.sflag (!%p272_p6), [#allocation3], %s4328_s10 }
  0x36   : > { %s3953_s11 = smul.u32 (!%p272_p6), 208, %s4328_s10 }
  0x38   : > { %s4332_s19 = scalar_lea.vmem (!%p272_p6), [#allocation2], %s3953_s11 }
  0x3c   : > { %4123 = dma.done.wait (%p4264_p7), %s278_s23, 3328  }
  0x3d   : > { %4125 = vsyncadd (%p4264_p7), %s278_s23, 4294963968  ;;  %v4162_v0 = vmov 0.0   ;;  %v4163_v1 = vmov 0   ;;  %v313_v2 = vld [vmem:[%s4332_s19] sm:$0xff]  ;;  %vm342_vm0 = vcmask 1043456   ;;  %v314_v3 = vld [vmem:[%s4332_s19 + $0x8] sm:$0xff] }
  0x3e   : > { %415 = vmatprep.mubr.f32.mxu0 %v4162_v0  ;;  %498 = vmatprep.mubr.f32.mxu1 %v4162_v0  ;;  %v330_v4 = vcombine.high %v313_v2, %v313_v2  ;;  %v331_v5 = vcombine.high %v314_v3, %v314_v3  ;;  %v315_v6 = vld [vmem:[%s4332_s19 + $0x10] sm:$0xff]  ;;  %v316_v7 = vld [vmem:[%s4332_s19 + $0x18] sm:$0xff]  ;;  %vm332_vm1 = vcmask 31744   ;;  %v317_v11 = vld [vmem:[%s4332_s19 + $0x20] sm:$0xff]  ;;  %vm1451_vm2 = vcmask 1041408   ;;  %s3954_s30 = smul.u32 832, %s4328_s10 }
  0x3f   : > { %4032 = vset.pattern.permute.xlu0 %v4163_v1  ;;  %4033 = vset.pattern.permute.xlu1 %v4163_v1  ;;  %v4347_v8 = vld [vmem:[%s5198_s1] sm:$0xff]  ;;  %v519_v9 = vcombine.high %v315_v6, %v315_v6  ;;  %v520_v10 = vcombine.high %v316_v7, %v316_v7  ;;  %v318_v12 = vld [vmem:[%s4332_s19 + $0x28] sm:$0xff]  ;;  %v697_v14 = vcombine.high %v317_v11, %v317_v11  ;;  %v4382_v17 = vld [vmem:[%s5198_s1 + $0x10] sm:$0x3]  ;;  %p5215_p7 = scmp.ne.s32.totalorder %s5213_s18, 0 }
  0x40   : > { %3731 = vmatprep.subr.msk.mxu0 %vm342_vm0, %v330_v4  ;;  %3736 = vmatprep.subr.msk.mxu1 %vm342_vm0, %v331_v5  ;;  %v4364_v13 = vld [vmem:[%s5198_s1 + $0x8] sm:$0xff]  ;;  %v698_v15 = vcombine.high %v318_v12, %v318_v12  ;;  %v1696_v16 = vld [vmem:[%s5201_s4] sm:$0x3f]  ;;  %v2607_v1 = vld [vmem:[%s5200_s3 + $0x10] sm:$0xff]  ;;  %s4646_s10 = scalar_lea.vmem [#allocation4], %s3954_s30  ;;  %s3947_s20 = sshll.u32 (%p5215_p7), %s4140_s27, 2 }
  0x41   : > { %3732 = vmatpush1.msk.msra.mxu0 %vm342_vm0, %v313_v2  ;;  %3737 = vmatpush1.msk.msra.mxu1 %vm342_vm0, %v314_v3  ;;  %v319_v18 = vld [vmem:[%s4332_s19 + $0x30] sm:$0xff]  ;;  %v320_v19 = vld [vmem:[%s4332_s19 + $0x38] sm:$0xff]  ;;  %v321_v24 = vld [vmem:[%s4332_s19 + $0x40] sm:$0xff]  ;;  %s3955_s22 = smul.u32 (%p5215_p7), 208, %s4144_s28 }
  0x42   : > { %3733 = vmatmul.mubr.msk.f32.vlgmr.msra.gmra.mrb[0].mxu0 %vm332_vm1, %v4347_v8  ;;  %3738 = vmatmul.mubr.msk.f32.vlgmr.msra.gmra.mrb[0].mxu1 %vm332_vm1, %v4347_v8  ;;  %v2527_v20 = vld [vmem:[%s5202_s5] sm:$0x3f]  ;;  %v875_v22 = vcombine.high %v319_v18, %v319_v18  ;;  %v876_v23 = vcombine.high %v320_v19, %v320_v19  ;;  %v322_v25 = vld [vmem:[%s4332_s19 + $0x48] sm:$0xff]  ;;  %v1053_v26 = vcombine.high %v321_v24, %v321_v24  ;;  %v324_v29 = vld [vmem:[%s4332_s19 + $0x58] sm:$0xff] }
  0x43   : > { %3741 = vmatprep.subr.msk.mxu0 %vm342_vm0, %v519_v9  ;;  %3746 = vmatprep.subr.msk.mxu1 %vm342_vm0, %v520_v10  ;;  %v3307_v21 = vld [vmem:[%s5203_s6] sm:$0x3f]  ;;  %v1054_v27 = vcombine.high %v322_v25, %v322_v25  ;;  %v1232_v31 = vcombine.high %v324_v29, %v324_v29  ;;  %v3792_v33 = vld [vmem:[%s4332_s19 + $0x68] sm:$0xff]  ;;  %v3794_v37 = vld [vmem:[%s4332_s19 + $0x78] sm:$0xff]  ;;  %s3419_s18 = sadd.s32 (%p5215_p7), %s3955_s22, %s3947_s20 }
  0x44   : > { %3742 = vmatpush1.msk.msra.mxu0 %vm342_vm0, %v315_v6  ;;  %3747 = vmatpush1.msk.msra.mxu1 %vm342_vm0, %v316_v7  ;;  %v323_v28 = vld [vmem:[%s4332_s19 + $0x50] sm:$0xff]  ;;  %v3791_v32 = vld [vmem:[%s4332_s19 + $0x60] sm:$0xff]  ;;  %v1764_v35 = vcombine.high %v3792_v33, %v3792_v33  ;;  %v1936_v39 = vcombine.high %v3794_v37, %v3794_v37  ;;  %v3796_v41 = vld [vmem:[%s4332_s19 + $0x88] sm:$0xff]  ;;  %s3948_s11 = sshll.u32 (%p5215_p7), %s3419_s18, 3 }
  0x45   : > { %421 = vmatprep.mubr.f32.mxu0 %v4162_v0  ;;  %504 = vmatprep.mubr.f32.mxu1 %v4162_v0  ;;  %v1231_v30 = vcombine.high %v323_v28, %v323_v28  ;;  %v1763_v34 = vcombine.high %v3791_v32, %v3791_v32  ;;  %v3793_v36 = vld [vmem:[%s4332_s19 + $0x70] sm:$0xff]  ;;  %v3795_v40 = vld [vmem:[%s4332_s19 + $0x80] sm:$0xff]  ;;  %v2102_v44 = vcombine.high %v3796_v41, %v3796_v41  ;;  %v1760_v45 = vld [vmem:[%s5199_s2 + $0x8] sm:$0xf]  ;;  %s4975_s28 = scalar_lea.vmem (%p5215_p7), %s5204_s7, %s3948_s11 }
  0x46   : > { %3734 = vmatmul.mubr.msk.f32.gmra.mrb[2].mxu0 %vm332_vm1, %v4364_v13  ;;  %3739 = vmatmul.mubr.msk.f32.gmra.mrb[2].mxu1 %vm332_vm1, %v4364_v13  ;;  %v1935_v38 = vcombine.high %v3793_v36, %v3793_v36  ;;  %v1759_v42 = vld [vmem:[%s5199_s2] sm:$0xff]  ;;  %v2101_v43 = vcombine.high %v3795_v40, %v3795_v40  ;;  %v3798_v47 = vld [vmem:[%s4332_s19 + $0x98] sm:$0xff]  ;;  %v3864_v51 = vld [vmem:[%s4332_s19 + $0xa8] sm:$0xff] }
  0x47   : > { %427 = vmatprep.mubr.f32.mxu0 %v4162_v0  ;;  %510 = vmatprep.mubr.f32.mxu1 %v4162_v0  ;;  %v3797_v46 = vld [vmem:[%s4332_s19 + $0x90] sm:$0xff]  ;;  %v2268_v49 = vcombine.high %v3798_v47, %v3798_v47  ;;  %v3863_v50 = vld [vmem:[%s4332_s19 + $0xa0] sm:$0xff]  ;;  %v2611_v53 = vcombine.high %v3864_v51, %v3864_v51  ;;  %v3866_v55 = vld [vmem:[%s4332_s19 + $0xb8] sm:$0xff] }
  0x48   : > { %3751 = vmatprep.subr.msk.mxu0 %vm342_vm0, %v697_v14  ;;  %3756 = vmatprep.subr.msk.mxu1 %vm342_vm0, %v698_v15  ;;  %v2267_v48 = vcombine.high %v3797_v46, %v3797_v46  ;;  %v2610_v52 = vcombine.high %v3863_v50, %v3863_v50  ;;  %v3865_v54 = vld [vmem:[%s4332_s19 + $0xb0] sm:$0xff]  ;;  %v2798_v57 = vcombine.high %v3866_v55, %v3866_v55  ;;  %v3867_v58 = vld [vmem:[%s4332_s19 + $0xc0] sm:$0xff]  ;;  %v3868_v59 = vld [vmem:[%s4332_s19 + $0xc8] sm:$0xff] }
  0x49   : > { %1699 = vperm.xlu0 %4032, %v1696_v16   ;;  %3310 = vperm.xlu1 %4033, %v3307_v21   ;;  %v2797_v56 = vcombine.high %v3865_v54, %v3865_v54  ;;  %v2605_v60 = vld [vmem:[%s5200_s3] sm:$0xff]  ;;  %v2975_v61 = vcombine.high %v3867_v58, %v3867_v58  ;;  %v2976_v62 = vcombine.high %v3868_v59, %v3868_v59  ;;  %v2606_v63 = vld [vmem:[%s5200_s3 + $0x8] sm:$0xff] }
  0x4a   : > { %3735 = vmatmul.mubr.msk.f32.gmra.mrb[4].mxu0 %vm332_vm1, %v4382_v17  ;;  %3740 = vmatmul.mubr.msk.f32.gmra.mrb[4].mxu1 %vm332_vm1, %v4382_v17 }
  0x4b   : > { %593 = vmatprep.mubr.f32.mxu0 %v4162_v0  ;;  %676 = vmatprep.mubr.f32.mxu1 %v4162_v0 }
  0x4d   : > { %2530 = vperm.xlu0 %4032, %v2527_v20  }
  0x4e   : > { %3743 = vmatmul.mubr.msk.f32.vlgmr.msra.gmra.mrb[6].mxu0 %vm332_vm1, %v4347_v8  ;;  %3748 = vmatmul.mubr.msk.f32.vlgmr.msra.gmra.mrb[6].mxu1 %vm332_vm1, %v4347_v8 }
  0x4f   : > { %3752 = vmatpush1.msk.msra.mxu0 %vm342_vm0, %v317_v11  ;;  %3757 = vmatpush1.msk.msra.mxu1 %vm342_vm0, %v318_v12 }
  0x50   : > { %599 = vmatprep.mubr.f32.mxu0 %v4162_v0  ;;  %682 = vmatprep.mubr.f32.mxu1 %v4162_v0 }
  0x51   : > { %3761 = vmatprep.subr.msk.mxu0 %vm342_vm0, %v875_v22  ;;  %3766 = vmatprep.subr.msk.mxu1 %vm342_vm0, %v876_v23 }
  0x52   : > { %3744 = vmatmul.mubr.msk.f32.gmra.mrb[8].mxu0 %vm332_vm1, %v4364_v13  ;;  %3749 = vmatmul.mubr.msk.f32.gmra.mrb[8].mxu1 %vm332_vm1, %v4364_v13 }
  0x53   : > { %605 = vmatprep.mubr.f32.mxu0 %v4162_v0  ;;  %688 = vmatprep.mubr.f32.mxu1 %v4162_v0 }
  0x56   : > { %3745 = vmatmul.mubr.msk.f32.gmra.mrb[10].mxu0 %vm332_vm1, %v4382_v17  ;;  %3750 = vmatmul.mubr.msk.f32.gmra.mrb[10].mxu1 %vm332_vm1, %v4382_v17 }
  0x57   : > { %771 = vmatprep.mubr.f32.mxu0 %v4162_v0  ;;  %854 = vmatprep.mubr.f32.mxu1 %v4162_v0 }
  0x5a   : > { %3753 = vmatmul.mubr.msk.f32.vlgmr.msra.gmra.mrb[12].mxu0 %vm332_vm1, %v4347_v8  ;;  %3758 = vmatmul.mubr.msk.f32.vlgmr.msra.gmra.mrb[12].mxu1 %vm332_vm1, %v4347_v8 }
  0x5b   : > { %3762 = vmatpush1.msk.msra.mxu0 %vm342_vm0, %v319_v18  ;;  %3767 = vmatpush1.msk.msra.mxu1 %vm342_vm0, %v320_v19 }
  0x5c   : > { %777 = vmatprep.mubr.f32.mxu0 %v4162_v0  ;;  %860 = vmatprep.mubr.f32.mxu1 %v4162_v0 }
  0x5d   : > { %3771 = vmatprep.subr.msk.mxu0 %vm342_vm0, %v1053_v26  ;;  %3776 = vmatprep.subr.msk.mxu1 %vm342_vm0, %v1054_v27 }
  0x5e   : > { %3754 = vmatmul.mubr.msk.f32.gmra.mrb[14].mxu0 %vm332_vm1, %v4364_v13  ;;  %3759 = vmatmul.mubr.msk.f32.gmra.mrb[14].mxu1 %vm332_vm1, %v4364_v13 }
  0x5f   : > { %783 = vmatprep.mubr.f32.mxu0 %v4162_v0  ;;  %866 = vmatprep.mubr.f32.mxu1 %v4162_v0 }
  0x62   : > { %3755 = vmatmul.mubr.msk.f32.gmra.mrb[16].mxu0 %vm332_vm1, %v4382_v17  ;;  %3760 = vmatmul.mubr.msk.f32.gmra.mrb[16].mxu1 %vm332_vm1, %v4382_v17 }
  0x63   : > { %949 = vmatprep.mubr.f32.mxu0 %v4162_v0  ;;  %1032 = vmatprep.mubr.f32.mxu1 %v4162_v0 }
  0x66   : > { %3763 = vmatmul.mubr.msk.f32.vlgmr.msra.gmra.mrb[18].mxu0 %vm332_vm1, %v4347_v8  ;;  %3768 = vmatmul.mubr.msk.f32.vlgmr.msra.gmra.mrb[18].mxu1 %vm332_vm1, %v4347_v8 }
  0x67   : > { %3772 = vmatpush1.msk.msra.mxu0 %vm342_vm0, %v321_v24  ;;  %3777 = vmatpush1.msk.msra.mxu1 %vm342_vm0, %v322_v25 }
  0x68   : > { %955 = vmatprep.mubr.f32.mxu0 %v4162_v0  ;;  %1038 = vmatprep.mubr.f32.mxu1 %v4162_v0 }
  0x69   : > { %3781 = vmatprep.subr.msk.mxu0 %vm342_vm0, %v1231_v30  ;;  %3786 = vmatprep.subr.msk.mxu1 %vm342_vm0, %v1232_v31 }
  0x6a   : > { %3764 = vmatmul.mubr.msk.f32.gmra.mrb[20].mxu0 %vm332_vm1, %v4364_v13  ;;  %3769 = vmatmul.mubr.msk.f32.gmra.mrb[20].mxu1 %vm332_vm1, %v4364_v13 }
  0x6b   : > { %961 = vmatprep.mubr.f32.mxu0 %v4162_v0  ;;  %1044 = vmatprep.mubr.f32.mxu1 %v4162_v0 }
  0x6e   : > { %3765 = vmatmul.mubr.msk.f32.gmra.mrb[22].mxu0 %vm332_vm1, %v4382_v17  ;;  %3770 = vmatmul.mubr.msk.f32.gmra.mrb[22].mxu1 %vm332_vm1, %v4382_v17 }
  0x6f   : > { %1127 = vmatprep.mubr.f32.mxu0 %v4162_v0  ;;  %1210 = vmatprep.mubr.f32.mxu1 %v4162_v0 }
  0x72   : > { %3773 = vmatmul.mubr.msk.f32.vlgmr.msra.gmra.mrb[24].mxu0 %vm332_vm1, %v4347_v8  ;;  %3778 = vmatmul.mubr.msk.f32.vlgmr.msra.gmra.mrb[24].mxu1 %vm332_vm1, %v4347_v8 }
  0x73   : > { %3782 = vmatpush1.msk.msra.mxu0 %vm342_vm0, %v323_v28  ;;  %3787 = vmatpush1.msk.msra.mxu1 %vm342_vm0, %v324_v29 }
  0x74   : > { %1133 = vmatprep.mubr.f32.mxu0 %v4162_v0  ;;  %1216 = vmatprep.mubr.f32.mxu1 %v4162_v0 }
  0x75   : > { %3799 = vmatprep.subr.msk.mxu0 %vm342_vm0, %v1763_v34  ;;  %3803 = vmatprep.subr.msk.mxu1 %vm342_vm0, %v1764_v35 }
  0x76   : > { %3774 = vmatmul.mubr.msk.f32.gmra.mrb[26].mxu0 %vm332_vm1, %v4364_v13  ;;  %3779 = vmatmul.mubr.msk.f32.gmra.mrb[26].mxu1 %vm332_vm1, %v4364_v13 }
  0x77   : > { %1139 = vmatprep.mubr.f32.mxu0 %v4162_v0  ;;  %1222 = vmatprep.mubr.f32.mxu1 %v4162_v0 }
  0x7a   : > { %3775 = vmatmul.mubr.msk.f32.gmra.mrb[28].mxu0 %vm332_vm1, %v4382_v17  ;;  %3780 = vmatmul.mubr.msk.f32.gmra.mrb[28].mxu1 %vm332_vm1, %v4382_v17 }
  0x7b   : > { %1305 = vmatprep.mubr.f32.mxu0 %v4162_v0  ;;  %1386 = vmatprep.mubr.f32.mxu1 %v4162_v0 }
  0x7e   : > { %3783 = vmatmul.mubr.msk.f32.vlgmr.msra.gmra.mrb[30].mxu0 %vm332_vm1, %v4347_v8  ;;  %3788 = vmatmul.mubr.msk.f32.vlgmr.msra.gmra.mrb[30].mxu1 %vm332_vm1, %v4347_v8 }
  0x7f   : > { %3800 = vmatpush1.msk.msra.mxu0 %vm342_vm0, %v3791_v32  ;;  %3804 = vmatpush1.msk.msra.mxu1 %vm342_vm0, %v3792_v33 }
  0x80   : > { %1311 = vmatprep.mubr.f32.mxu0 %v4162_v0  ;;  %1392 = vmatprep.mubr.f32.mxu1 %v4162_v0 }
  0x81   : > { %3807 = vmatprep.subr.msk.mxu0 %vm342_vm0, %v1935_v38  ;;  %3811 = vmatprep.subr.msk.mxu1 %vm342_vm0, %v1936_v39 }
  0x82   : > { %3784 = vmatmul.mubr.msk.f32.gmra.mrb[32].mxu0 %vm332_vm1, %v4364_v13  ;;  %3789 = vmatmul.mubr.msk.f32.gmra.mrb[32].mxu1 %vm332_vm1, %v4364_v13 }
  0x83   : > { %1317 = vmatprep.mubr.f32.mxu0 %v4162_v0  ;;  %1398 = vmatprep.mubr.f32.mxu1 %v4162_v0 }
  0x86   : > { %3785 = vmatmul.mubr.msk.f32.gmra.mrb[34].mxu0 %vm332_vm1, %v4382_v17  ;;  %3790 = vmatmul.mubr.msk.f32.gmra.mrb[34].mxu1 %vm332_vm1, %v4382_v17 }
  0x87   : > { %1843 = vmatprep.mubr.f32.mxu0 %v4162_v0  ;;  %1920 = vmatprep.mubr.f32.mxu1 %v4162_v0 }
  0x8a   : > { %3801 = vmatmul.mubr.msk.f32.vlgmr.msra.gmra.mrb[36].mxu0 %vm332_vm1, %v1759_v42  ;;  %3805 = vmatmul.mubr.msk.f32.vlgmr.msra.gmra.mrb[36].mxu1 %vm332_vm1, %v1759_v42 }
  0x8b   : > { %3808 = vmatpush1.msk.msra.mxu0 %vm342_vm0, %v3793_v36  ;;  %3812 = vmatpush1.msk.msra.mxu1 %vm342_vm0, %v3794_v37 }
  0x8c   : > { %1849 = vmatprep.mubr.f32.mxu0 %v4162_v0  ;;  %1926 = vmatprep.mubr.f32.mxu1 %v4162_v0 }
  0x8d   : > { %3815 = vmatprep.subr.msk.mxu0 %vm342_vm0, %v2101_v43  ;;  %3819 = vmatprep.subr.msk.mxu1 %vm342_vm0, %v2102_v44 }
  0x8e   : > { %3802 = vmatmul.mubr.msk.f32.gmra.mrb[38].mxu0 %vm332_vm1, %v1760_v45  ;;  %3806 = vmatmul.mubr.msk.f32.gmra.mrb[38].mxu1 %vm332_vm1, %v1760_v45 }
  0x8f   : > { %2009 = vmatprep.mubr.f32.mxu0 %v4162_v0  ;;  %2086 = vmatprep.mubr.f32.mxu1 %v4162_v0 }
  0x92   : > { %3809 = vmatmul.mubr.msk.f32.vlgmr.msra.gmra.mrb[40].mxu0 %vm332_vm1, %v1759_v42  ;;  %3813 = vmatmul.mubr.msk.f32.vlgmr.msra.gmra.mrb[40].mxu1 %vm332_vm1, %v1759_v42 }
  0x93   : > { %3816 = vmatpush1.msk.msra.mxu0 %vm342_vm0, %v3795_v40  ;;  %3820 = vmatpush1.msk.msra.mxu1 %vm342_vm0, %v3796_v41 }
  0x94   : > { %2015 = vmatprep.mubr.f32.mxu0 %v4162_v0  ;;  %2092 = vmatprep.mubr.f32.mxu1 %v4162_v0 }
  0x95   : > { %3823 = vmatprep.subr.msk.mxu0 %vm342_vm0, %v2267_v48  ;;  %3827 = vmatprep.subr.msk.mxu1 %vm342_vm0, %v2268_v49 }
  0x96   : > { %3810 = vmatmul.mubr.msk.f32.gmra.mrb[42].mxu0 %vm332_vm1, %v1760_v45  ;;  %3814 = vmatmul.mubr.msk.f32.gmra.mrb[42].mxu1 %vm332_vm1, %v1760_v45 }
  0x97   : > { %2175 = vmatprep.mubr.f32.mxu0 %v4162_v0  ;;  %2252 = vmatprep.mubr.f32.mxu1 %v4162_v0 }
  0x9a   : > { %3817 = vmatmul.mubr.msk.f32.vlgmr.msra.gmra.mrb[44].mxu0 %vm332_vm1, %v1759_v42  ;;  %3821 = vmatmul.mubr.msk.f32.vlgmr.msra.gmra.mrb[44].mxu1 %vm332_vm1, %v1759_v42 }
  0x9b   : > { %3824 = vmatpush1.msk.msra.mxu0 %vm342_vm0, %v3797_v46  ;;  %3828 = vmatpush1.msk.msra.mxu1 %vm342_vm0, %v3798_v47 }
  0x9c   : > { %2181 = vmatprep.mubr.f32.mxu0 %v4162_v0  ;;  %2258 = vmatprep.mubr.f32.mxu1 %v4162_v0 }
  0x9d   : > { %3869 = vmatprep.subr.msk.mxu0 %vm342_vm0, %v2610_v52  ;;  %3874 = vmatprep.subr.msk.mxu1 %vm342_vm0, %v2611_v53 }
  0x9e   : > { %3818 = vmatmul.mubr.msk.f32.gmra.mrb[46].mxu0 %vm332_vm1, %v1760_v45  ;;  %3822 = vmatmul.mubr.msk.f32.gmra.mrb[46].mxu1 %vm332_vm1, %v1760_v45 }
  0x9f   : > { %2341 = vmatprep.mubr.f32.mxu0 %v4162_v0  ;;  %2418 = vmatprep.mubr.f32.mxu1 %v4162_v0 }
  0xa2   : > { %3825 = vmatmul.mubr.msk.f32.vlgmr.msra.gmra.mrb[48].mxu0 %vm332_vm1, %v1759_v42  ;;  %3829 = vmatmul.mubr.msk.f32.vlgmr.msra.gmra.mrb[48].mxu1 %vm332_vm1, %v1759_v42 }
  0xa3   : > { %3870 = vmatpush1.msk.msra.mxu0 %vm342_vm0, %v3863_v50  ;;  %3875 = vmatpush1.msk.msra.mxu1 %vm342_vm0, %v3864_v51 }
  0xa4   : > { %2347 = vmatprep.mubr.f32.mxu0 %v4162_v0  ;;  %2424 = vmatprep.mubr.f32.mxu1 %v4162_v0 }
  0xa5   : > { %3879 = vmatprep.subr.msk.mxu0 %vm342_vm0, %v2797_v56  ;;  %3884 = vmatprep.subr.msk.mxu1 %vm342_vm0, %v2798_v57 }
  0xa6   : > { %3826 = vmatmul.mubr.msk.f32.gmra.mrb[50].mxu0 %vm332_vm1, %v1760_v45  ;;  %3830 = vmatmul.mubr.msk.f32.gmra.mrb[50].mxu1 %vm332_vm1, %v1760_v45 }
  0xa7   : > { %2693 = vmatprep.mubr.f32.mxu0 %v4162_v0  ;;  %2776 = vmatprep.mubr.f32.mxu1 %v4162_v0 }
  0xaa   : > { %3871 = vmatmul.mubr.msk.f32.vlgmr.msra.gmra.mrb[52].mxu0 %vm332_vm1, %v2605_v60  ;;  %3876 = vmatmul.mubr.msk.f32.vlgmr.msra.gmra.mrb[52].mxu1 %vm332_vm1, %v2605_v60 }
  0xab   : > { %3880 = vmatpush1.msk.msra.mxu0 %vm342_vm0, %v3865_v54  ;;  %3885 = vmatpush1.msk.msra.mxu1 %vm342_vm0, %v3866_v55 }
  0xac   : > { %2699 = vmatprep.mubr.f32.mxu0 %v4162_v0  ;;  %2782 = vmatprep.mubr.f32.mxu1 %v4162_v0 }
  0xad   : > { %3889 = vmatprep.subr.msk.mxu0 %vm342_vm0, %v2975_v61  ;;  %3894 = vmatprep.subr.msk.mxu1 %vm342_vm0, %v2976_v62 }
  0xae   : > { %3872 = vmatmul.mubr.msk.f32.gmra.mrb[54].mxu0 %vm332_vm1, %v2606_v63  ;;  %3877 = vmatmul.mubr.msk.f32.gmra.mrb[54].mxu1 %vm332_vm1, %v2606_v63 }
  0xaf   : > { %2705 = vmatprep.mubr.f32.mxu0 %v4162_v0  ;;  %2788 = vmatprep.mubr.f32.mxu1 %v4162_v0 }
  0xb2   : > { %3873 = vmatmul.mubr.msk.f32.gmra.mrb[56].mxu0 %vm332_vm1, %v2607_v1  ;;  %3878 = vmatmul.mubr.msk.f32.gmra.mrb[56].mxu1 %vm332_vm1, %v2607_v1 }
  0xb3   : > { %2871 = vmatprep.mubr.f32.mxu0 %v4162_v0  ;;  %2954 = vmatprep.mubr.f32.mxu1 %v4162_v0 }
  0xb6   : > { %3881 = vmatmul.mubr.msk.f32.vlgmr.msra.gmra.mrb[58].mxu0 %vm332_vm1, %v2605_v60  ;;  %3886 = vmatmul.mubr.msk.f32.vlgmr.msra.gmra.mrb[58].mxu1 %vm332_vm1, %v2605_v60 }
  0xb7   : > { %3890 = vmatpush1.msk.msra.mxu0 %vm342_vm0, %v3867_v58  ;;  %3895 = vmatpush1.msk.msra.mxu1 %vm342_vm0, %v3868_v59 }
  0xb8   : > { %2877 = vmatprep.mubr.f32.mxu0 %v4162_v0  ;;  %2960 = vmatprep.mubr.f32.mxu1 %v4162_v0 }
  0xba   : > { %3882 = vmatmul.mubr.msk.f32.gmra.mrb[60].mxu0 %vm332_vm1, %v2606_v63  ;;  %3887 = vmatmul.mubr.msk.f32.gmra.mrb[60].mxu1 %vm332_vm1, %v2606_v63 }
  0xbb   : > { %2883 = vmatprep.mubr.f32.mxu0 %v4162_v0  ;;  %2966 = vmatprep.mubr.f32.mxu1 %v4162_v0 }
  0xbe   : > { %3883 = vmatmul.mubr.msk.f32.gmra.mrb[62].mxu0 %vm332_vm1, %v2607_v1  ;;  %3888 = vmatmul.mubr.msk.f32.gmra.mrb[62].mxu1 %vm332_vm1, %v2607_v1 }
  0xbf   : > { %3049 = vmatprep.mubr.f32.mxu0 %v4162_v0  ;;  %3132 = vmatprep.mubr.f32.mxu1 %v4162_v0 }
  0xc2   : > { %3891 = vmatmul.mubr.msk.f32.vlgmr.msra.gmra.mrb[64].mxu0 %vm332_vm1, %v2605_v60  ;;  %3896 = vmatmul.mubr.msk.f32.vlgmr.msra.gmra.mrb[64].mxu1 %vm332_vm1, %v2605_v60 }
  0xc3   : > { %3055 = vmatprep.mubr.f32.mxu0 %v4162_v0  ;;  %3138 = vmatprep.mubr.f32.mxu1 %v4162_v0 }
  0xc6   : > { %3892 = vmatmul.mubr.msk.f32.gmra.mrb[66].mxu0 %vm332_vm1, %v2606_v63  ;;  %3897 = vmatmul.mubr.msk.f32.gmra.mrb[66].mxu1 %vm332_vm1, %v2606_v63 }
  0xc7   : > { %3061 = vmatprep.mubr.f32.mxu0 %v4162_v0  ;;  %3144 = vmatprep.mubr.f32.mxu1 %v4162_v0 }
  0xc8   : > { %v4636_v33 = vpop.permute.xlu0 %1699 }
  0xca   : > { %3893 = vmatmul.mubr.msk.f32.gmra.mrb[68].mxu0 %vm332_vm1, %v2607_v1  ;;  %3898 = vmatmul.mubr.msk.f32.gmra.mrb[68].mxu1 %vm332_vm1, %v2607_v1 }
 0x115   : > { %v417_v2 = vpop.f32.mrb[0].mxu0  ;;  %v500_v3 = vpop.f32.mrb[0].mxu1 }
 0x116   : > { %v419_v4 = vpop.f32.mrb[1].mxu0  ;;  %v502_v5 = vpop.f32.mrb[1].mxu1  ;;  %v1452_v8 = vrot.slane %v417_v2, 6  ;;  %v1458_v9 = vrot.slane %v500_v3, 6 }
 0x117   : > { %v1455_v14 = vrot.slane %v419_v4, 6  ;;  %v1461_v15 = vrot.slane %v502_v5, 6 }
 0x119   : > { %v423_v6 = vpop.f32.mrb[2].mxu0  ;;  %v506_v7 = vpop.f32.mrb[2].mxu1 }
 0x11a   : > { %v1453_v10 = vrot.slane %v423_v6, 6  ;;  %v1459_v11 = vrot.slane %v506_v7, 6  ;;  %v425_v12 = vpop.f32.mrb[3].mxu0  ;;  %v508_v13 = vpop.f32.mrb[3].mxu1  ;;  %v1592_v23 = vrot.slane %v423_v6, 4  ;;  %v1598_v24 = vrot.slane %v506_v7, 4 }
 0x11b   : > { %v1456_v0 = vrot.slane %v425_v12, 6  ;;  %v1462_v16 = vrot.slane %v508_v13, 6  ;;  %v1595_v29 = vrot.slane %v425_v12, 4  ;;  %v1601_v30 = vrot.slane %v508_v13, 4 }
 0x11c   : > { %v1454_v17 = vsel %vm1451_vm2, %v1452_v8, %v1453_v10  ;;  %v1460_v18 = vsel %vm1451_vm2, %v1458_v9, %v1459_v11 }
 0x11d   : > { %v429_v19 = vpop.f32.mrb[4].mxu0  ;;  %v512_v20 = vpop.f32.mrb[4].mxu1  ;;  %v1457_v21 = vsel %vm1451_vm2, %v1455_v14, %v1456_v0  ;;  %v1463_v22 = vsel %vm1451_vm2, %v1461_v15, %v1462_v16 }
 0x11e   : > { %v1593_v25 = vrot.slane %v429_v19, 4  ;;  %v1599_v26 = vrot.slane %v512_v20, 4  ;;  %v431_v27 = vpop.f32.mrb[5].mxu0  ;;  %v514_v28 = vpop.f32.mrb[5].mxu1 }
 0x11f   : > { %v1596_v31 = vrot.slane %v431_v27, 4  ;;  %v1602_v32 = vrot.slane %v514_v28, 4 }
 0x120   : > { %v1594_v34 = vsel %vm342_vm0, %v1592_v23, %v1593_v25  ;;  %v1600_v35 = vsel %vm342_vm0, %v1598_v24, %v1599_v26 }
 0x121   : > { %v595_v36 = vpop.f32.mrb[6].mxu0  ;;  %v678_v37 = vpop.f32.mrb[6].mxu1  ;;  %v1597_v38 = vsel %vm342_vm0, %v1595_v29, %v1596_v31  ;;  %v1603_v39 = vsel %vm342_vm0, %v1601_v30, %v1602_v32 }
 0x122   : > { %v1548_v40 = vadd.f32 %v1454_v17, %v595_v36  ;;  %v1550_v41 = vadd.f32 %v1460_v18, %v678_v37  ;;  %v597_v42 = vpop.f32.mrb[7].mxu0  ;;  %v680_v43 = vpop.f32.mrb[7].mxu1  ;;  %v1464_v52 = vrot.slane %v595_v36, 6  ;;  %v1470_v53 = vrot.slane %v678_v37, 6 }
 0x123   : > { %v1549_v44 = vadd.f32 %v1457_v21, %v597_v42  ;;  %v1551_v45 = vadd.f32 %v1463_v22, %v680_v43  ;;  %v1467_v58 = vrot.slane %v597_v42, 6  ;;  %v1473_v59 = vrot.slane %v680_v43, 6 }
 0x124   : > { %v1702_v46 = vadd.f32 %v4636_v33, %v1548_v40  ;;  %v1704_v47 = vadd.f32 %v4636_v33, %v1550_v41 }
 0x125   : > { %v1703_v48 = vadd.f32 %v4636_v33, %v1549_v44  ;;  %v1705_v49 = vadd.f32 %v4636_v33, %v1551_v45  ;;  %v601_v50 = vpop.f32.mrb[8].mxu0  ;;  %v684_v51 = vpop.f32.mrb[8].mxu1 }
 0x126   : > { %1726 = vst [vmem:[%s4646_s10] sm:$0x3f] %v1702_v46  ;;  %1728 = vst [vmem:[%s4646_s10 + $0x10] sm:$0x3f] %v1704_v47  ;;  %v1465_v54 = vrot.slane %v601_v50, 6  ;;  %v1471_v55 = vrot.slane %v684_v51, 6  ;;  %v603_v56 = vpop.f32.mrb[9].mxu0 }
 0x127   : > { %v686_v57 = vpop.f32.mrb[9].mxu1  ;;  %1727 = vst [vmem:[%s4646_s10 + $0x8] sm:$0x3f] %v1703_v48  ;;  %1729 = vst [vmem:[%s4646_s10 + $0x18] sm:$0x3f] %v1705_v49  ;;  %v1468_v60 = vrot.slane %v603_v56, 6 }
 0x128   : > { %v1474_v61 = vrot.slane %v686_v57, 6  ;;  %v1466_v62 = vsel %vm1451_vm2, %v1464_v52, %v1465_v54  ;;  %v1472_v63 = vsel %vm1451_vm2, %v1470_v53, %v1471_v55  ;;  %v1604_v5 = vrot.slane %v601_v50, 4 }
 0x129   : > { %v607_v1 = vpop.f32.mrb[10].mxu0  ;;  %v690_v2 = vpop.f32.mrb[10].mxu1  ;;  %v1469_v3 = vsel %vm1451_vm2, %v1467_v58, %v1468_v60  ;;  %v1610_v6 = vrot.slane %v684_v51, 4  ;;  %v1607_v11 = vrot.slane %v603_v56, 4  ;;  %v1613_v12 = vrot.slane %v686_v57, 4 }
 0x12a   : > { %v1475_v4 = vsel %vm1451_vm2, %v1473_v59, %v1474_v61  ;;  %v1605_v7 = vrot.slane %v607_v1, 4  ;;  %v1611_v8 = vrot.slane %v690_v2, 4  ;;  %v609_v9 = vpop.f32.mrb[11].mxu0  ;;  %v692_v10 = vpop.f32.mrb[11].mxu1 }
 0x12b   : > { %v1608_v13 = vrot.slane %v609_v9, 4  ;;  %v1614_v14 = vrot.slane %v692_v10, 4 }
 0x12c   : > { %v4657_v15 = vsel %vm342_vm0, %v1604_v5, %v1605_v7  ;;  %v4660_v0 = vsel %vm342_vm0, %v1610_v6, %v1611_v8 }
 0x12d   : > { %v773_v16 = vpop.f32.mrb[12].mxu0  ;;  %v856_v17 = vpop.f32.mrb[12].mxu1  ;;  %v1609_v18 = vsel %vm342_vm0, %v1607_v11, %v1608_v13  ;;  %v1615_v19 = vsel %vm342_vm0, %v1613_v12, %v1614_v14 }
 0x12e   : > { %v1552_v20 = vadd.f32 %v1466_v62, %v773_v16  ;;  %v1554_v21 = vadd.f32 %v1472_v63, %v856_v17  ;;  %v775_v22 = vpop.f32.mrb[13].mxu0  ;;  %v858_v23 = vpop.f32.mrb[13].mxu1  ;;  %v1476_v32 = vrot.slane %v773_v16, 6  ;;  %v1482_v43 = vrot.slane %v856_v17, 6 }
 0x12f   : > { %v1553_v24 = vadd.f32 %v1469_v3, %v775_v22  ;;  %v1555_v25 = vadd.f32 %v1475_v4, %v858_v23 }
 0x130   : > { %v1676_v26 = vadd.f32 %v1594_v34, %v1552_v20  ;;  %v1678_v27 = vadd.f32 %v1600_v35, %v1554_v21 }
 0x131   : > { %v1677_v28 = vadd.f32 %v1597_v38, %v1553_v24  ;;  %v1679_v29 = vadd.f32 %v1603_v39, %v1555_v25  ;;  %v779_v30 = vpop.f32.mrb[14].mxu0  ;;  %v862_v31 = vpop.f32.mrb[14].mxu1  ;;  %v1479_v38 = vrot.slane %v775_v22, 6  ;;  %v1485_v39 = vrot.slane %v858_v23, 6 }
 0x132   : > { %v1706_v36 = vadd.f32 %v4636_v33, %v1676_v26  ;;  %v1708_v37 = vadd.f32 %v4636_v33, %v1678_v27  ;;  %v1477_v40 = vrot.slane %v779_v30, 6  ;;  %v781_v41 = vpop.f32.mrb[15].mxu0  ;;  %v864_v42 = vpop.f32.mrb[15].mxu1  ;;  %v1483_v44 = vrot.slane %v862_v31, 6 }
 0x133   : > { %v1707_v34 = vadd.f32 %v4636_v33, %v1677_v28  ;;  %v1709_v35 = vadd.f32 %v4636_v33, %v1679_v29  ;;  %v1480_v45 = vrot.slane %v781_v41, 6  ;;  %v1486_v46 = vrot.slane %v864_v42, 6 }
 0x134   : > { %1730 = vst [vmem:[%s4646_s10 + $0x20] sm:$0x3f] %v1706_v36  ;;  %1732 = vst [vmem:[%s4646_s10 + $0x30] sm:$0x3f] %v1708_v37  ;;  %v1616_v47 = vrot.slane %v779_v30, 4  ;;  %v1622_v48 = vrot.slane %v862_v31, 4  ;;  %v1478_v51 = vsel %vm1451_vm2, %v1476_v32, %v1477_v40  ;;  %v1484_v52 = vsel %vm1451_vm2, %v1482_v43, %v1483_v44 }
 0x135   : > { %1731 = vst [vmem:[%s4646_s10 + $0x28] sm:$0x3f] %v1707_v34  ;;  %1733 = vst [vmem:[%s4646_s10 + $0x38] sm:$0x3f] %v1709_v35  ;;  %v785_v49 = vpop.f32.mrb[16].mxu0  ;;  %v868_v50 = vpop.f32.mrb[16].mxu1  ;;  %v1481_v57 = vsel %vm1451_vm2, %v1479_v38, %v1480_v45  ;;  %v1487_v58 = vsel %vm1451_vm2, %v1485_v39, %v1486_v46 }
 0x136   : > { %v1617_v53 = vrot.slane %v785_v49, 4  ;;  %v1623_v54 = vrot.slane %v868_v50, 4  ;;  %v787_v55 = vpop.f32.mrb[17].mxu0  ;;  %v870_v56 = vpop.f32.mrb[17].mxu1  ;;  %v1619_v59 = vrot.slane %v781_v41, 4  ;;  %v1625_v60 = vrot.slane %v864_v42, 4 }
 0x137   : > { %v1620_v61 = vrot.slane %v787_v55, 4  ;;  %v1626_v62 = vrot.slane %v870_v56, 4 }
 0x138   : > { %v4677_v63 = vsel %vm342_vm0, %v1616_v47, %v1617_v53  ;;  %v4680_v1 = vsel %vm342_vm0, %v1622_v48, %v1623_v54 }
 0x139   : > { %v951_v2 = vpop.f32.mrb[18].mxu0  ;;  %v1034_v3 = vpop.f32.mrb[18].mxu1  ;;  %v1621_v4 = vsel %vm342_vm0, %v1619_v59, %v1620_v61  ;;  %v1627_v5 = vsel %vm342_vm0, %v1625_v60, %v1626_v62 }
 0x13a   : > { %v1556_v6 = vadd.f32 %v1478_v51, %v951_v2  ;;  %v1558_v7 = vadd.f32 %v1484_v52, %v1034_v3  ;;  %v953_v8 = vpop.f32.mrb[19].mxu0  ;;  %v1036_v9 = vpop.f32.mrb[19].mxu1  ;;  %v1488_v21 = vrot.slane %v951_v2, 6  ;;  %v1494_v27 = vrot.slane %v1034_v3, 6 }
 0x13b   : > { %v1557_v10 = vadd.f32 %v1481_v57, %v953_v8  ;;  %v1559_v11 = vadd.f32 %v1487_v58, %v1036_v9 }
 0x13c   : > { %v1680_v12 = vadd.f32 %v4657_v15, %v1556_v6  ;;  %v1682_v13 = vadd.f32 %v4660_v0, %v1558_v7 }
 0x13d   : > { %v1681_v14 = vadd.f32 %v1609_v18, %v1557_v10  ;;  %v1683_v16 = vadd.f32 %v1615_v19, %v1559_v11  ;;  %v957_v17 = vpop.f32.mrb[20].mxu0  ;;  %v1040_v20 = vpop.f32.mrb[20].mxu1  ;;  %v1491_v18 = vrot.slane %v953_v8, 6  ;;  %v1497_v19 = vrot.slane %v1036_v9, 6 }
 0x13e   : > { %v1710_v22 = vadd.f32 %v4636_v33, %v1680_v12  ;;  %v1712_v23 = vadd.f32 %v4636_v33, %v1682_v13  ;;  %v1489_v24 = vrot.slane %v957_v17, 6  ;;  %v959_v25 = vpop.f32.mrb[21].mxu0  ;;  %v1042_v26 = vpop.f32.mrb[21].mxu1  ;;  %v1495_v28 = vrot.slane %v1040_v20, 6 }
 0x13f   : > { %v1711_v15 = vadd.f32 %v4636_v33, %v1681_v14  ;;  %v1713_v0 = vadd.f32 %v4636_v33, %v1683_v16  ;;  %v1492_v29 = vrot.slane %v959_v25, 6  ;;  %v1498_v30 = vrot.slane %v1042_v26, 6 }
 0x140   : > { %1734 = vst [vmem:[%s4646_s10 + $0x40] sm:$0x3f] %v1710_v22  ;;  %1736 = vst [vmem:[%s4646_s10 + $0x50] sm:$0x3f] %v1712_v23  ;;  %v1628_v31 = vrot.slane %v957_v17, 4  ;;  %v1634_v32 = vrot.slane %v1040_v20, 4  ;;  %v1490_v40 = vsel %vm1451_vm2, %v1488_v21, %v1489_v24  ;;  %v1496_v41 = vsel %vm1451_vm2, %v1494_v27, %v1495_v28 }
 0x141   : > { %1735 = vst [vmem:[%s4646_s10 + $0x48] sm:$0x3f] %v1711_v15  ;;  %1737 = vst [vmem:[%s4646_s10 + $0x58] sm:$0x3f] %v1713_v0  ;;  %v963_v36 = vpop.f32.mrb[22].mxu0  ;;  %v1046_v37 = vpop.f32.mrb[22].mxu1  ;;  %v1493_v44 = vsel %vm1451_vm2, %v1491_v18, %v1492_v29  ;;  %v1499_v38 = vsel %vm1451_vm2, %v1497_v19, %v1498_v30 }
 0x142   : > { %v1629_v42 = vrot.slane %v963_v36, 4  ;;  %v1635_v43 = vrot.slane %v1046_v37, 4  ;;  %v965_v34 = vpop.f32.mrb[23].mxu0  ;;  %v1048_v35 = vpop.f32.mrb[23].mxu1  ;;  %v1631_v39 = vrot.slane %v959_v25, 4  ;;  %v1637_v45 = vrot.slane %v1042_v26, 4 }
 0x143   : > { %v1632_v46 = vrot.slane %v965_v34, 4  ;;  %v1638_v47 = vrot.slane %v1048_v35, 4 }
 0x144   : > { %v4699_v48 = vsel %vm342_vm0, %v1628_v31, %v1629_v42  ;;  %v4702_v49 = vsel %vm342_vm0, %v1634_v32, %v1635_v43 }
 0x145   : > { %v1129_v50 = vpop.f32.mrb[24].mxu0  ;;  %v1212_v51 = vpop.f32.mrb[24].mxu1  ;;  %v4705_v52 = vsel %vm342_vm0, %v1631_v39, %v1632_v46  ;;  %v4708_v53 = vsel %vm342_vm0, %v1637_v45, %v1638_v47 }
 0x146   : > { %v1560_v54 = vadd.f32 %v1490_v40, %v1129_v50  ;;  %v1562_v55 = vadd.f32 %v1496_v41, %v1212_v51  ;;  %v1131_v56 = vpop.f32.mrb[25].mxu0  ;;  %v1214_v57 = vpop.f32.mrb[25].mxu1  ;;  %v1500_v7 = vrot.slane %v1129_v50, 6  ;;  %v1506_v13 = vrot.slane %v1212_v51, 6 }
 0x147   : > { %v1561_v58 = vadd.f32 %v1493_v44, %v1131_v56  ;;  %v1563_v59 = vadd.f32 %v1499_v38, %v1214_v57 }
 0x148   : > { %v1684_v60 = vadd.f32 %v4677_v63, %v1560_v54  ;;  %v1686_v61 = vadd.f32 %v4680_v1, %v1562_v55 }
 0x149   : > { %v1685_v62 = vadd.f32 %v1621_v4, %v1561_v58  ;;  %v1687_v2 = vadd.f32 %v1627_v5, %v1563_v59  ;;  %v1135_v3 = vpop.f32.mrb[26].mxu0  ;;  %v1218_v6 = vpop.f32.mrb[26].mxu1  ;;  %v1503_v4 = vrot.slane %v1131_v56, 6  ;;  %v1509_v5 = vrot.slane %v1214_v57, 6 }
 0x14a   : > { %v1714_v8 = vadd.f32 %v4636_v33, %v1684_v60  ;;  %v1716_v9 = vadd.f32 %v4636_v33, %v1686_v61  ;;  %v1501_v10 = vrot.slane %v1135_v3, 6  ;;  %v1137_v11 = vpop.f32.mrb[27].mxu0  ;;  %v1220_v12 = vpop.f32.mrb[27].mxu1  ;;  %v1507_v14 = vrot.slane %v1218_v6, 6 }
 0x14b   : > { %v1715_v63 = vadd.f32 %v4636_v33, %v1685_v62  ;;  %v1717_v1 = vadd.f32 %v4636_v33, %v1687_v2  ;;  %v1504_v16 = vrot.slane %v1137_v11, 6  ;;  %v1510_v17 = vrot.slane %v1220_v12, 6 }
 0x14c   : > { %1738 = vst [vmem:[%s4646_s10 + $0x60] sm:$0x3f] %v1714_v8  ;;  %1740 = vst [vmem:[%s4646_s10 + $0x70] sm:$0x3f] %v1716_v9  ;;  %v1640_v20 = vrot.slane %v1135_v3, 4  ;;  %v1646_v21 = vrot.slane %v1218_v6, 4  ;;  %v1502_v24 = vsel %vm1451_vm2, %v1500_v7, %v1501_v10  ;;  %v1508_v25 = vsel %vm1451_vm2, %v1506_v13, %v1507_v14 }
 0x14d   : > { %1739 = vst [vmem:[%s4646_s10 + $0x68] sm:$0x3f] %v1715_v63  ;;  %1741 = vst [vmem:[%s4646_s10 + $0x78] sm:$0x3f] %v1717_v1  ;;  %v1141_v22 = vpop.f32.mrb[28].mxu0  ;;  %v1224_v23 = vpop.f32.mrb[28].mxu1  ;;  %v1505_v28 = vsel %vm1451_vm2, %v1503_v4, %v1504_v16  ;;  %v1511_v18 = vsel %vm1451_vm2, %v1509_v5, %v1510_v17 }
 0x14e   : > { %v1641_v26 = vrot.slane %v1141_v22, 4  ;;  %v1647_v27 = vrot.slane %v1224_v23, 4  ;;  %v1143_v15 = vpop.f32.mrb[29].mxu0  ;;  %v1226_v0 = vpop.f32.mrb[29].mxu1  ;;  %v1643_v19 = vrot.slane %v1137_v11, 4  ;;  %v1649_v29 = vrot.slane %v1220_v12, 4 }
 0x14f   : > { %v1644_v30 = vrot.slane %v1143_v15, 4  ;;  %v1650_v31 = vrot.slane %v1226_v0, 4  ;;  %v4746_v17 = vpop.permute.xlu0 %2530 }
 0x150   : > { %v1642_v32 = vsel %vm342_vm0, %v1640_v20, %v1641_v26  ;;  %v1648_v36 = vsel %vm342_vm0, %v1646_v21, %v1647_v27 }
 0x151   : > { %v1645_v37 = vsel %vm342_vm0, %v1643_v19, %v1644_v30  ;;  %v1651_v40 = vsel %vm342_vm0, %v1649_v29, %v1650_v31  ;;  %v1307_v41 = vpop.f32.mrb[30].mxu0  ;;  %v1388_v42 = vpop.f32.mrb[30].mxu1 }
 0x152   : > { %v1564_v43 = vadd.f32 %v1502_v24, %v1307_v41  ;;  %v1566_v34 = vadd.f32 %v1508_v25, %v1388_v42  ;;  %v1309_v35 = vpop.f32.mrb[31].mxu0  ;;  %v1390_v44 = vpop.f32.mrb[31].mxu1  ;;  %v1512_v45 = vrot.slane %v1307_v41, 6  ;;  %v1518_v47 = vrot.slane %v1388_v42, 6 }
 0x153   : > { %v1565_v38 = vadd.f32 %v1505_v28, %v1309_v35  ;;  %v1567_v39 = vadd.f32 %v1511_v18, %v1390_v44  ;;  %v1515_v51 = vrot.slane %v1309_v35, 6  ;;  %v1521_v55 = vrot.slane %v1390_v44, 6 }
 0x154   : > { %v1688_v46 = vadd.f32 %v4699_v48, %v1564_v43  ;;  %v1690_v50 = vadd.f32 %v4702_v49, %v1566_v34 }
 0x155   : > { %v1689_v54 = vadd.f32 %v4705_v52, %v1565_v38  ;;  %v1691_v56 = vadd.f32 %v4708_v53, %v1567_v39  ;;  %v1313_v57 = vpop.f32.mrb[32].mxu0  ;;  %v1394_v58 = vpop.f32.mrb[32].mxu1 }
 0x156   : > { %v1718_v59 = vadd.f32 %v4636_v33, %v1688_v46  ;;  %v1720_v60 = vadd.f32 %v4636_v33, %v1690_v50  ;;  %v1513_v48 = vrot.slane %v1313_v57, 6  ;;  %v1519_v61 = vrot.slane %v1394_v58, 6  ;;  %v1315_v62 = vpop.f32.mrb[33].mxu0  ;;  %v1396_v49 = vpop.f32.mrb[33].mxu1 }
 0x157   : > { %v1719_v2 = vadd.f32 %v4636_v33, %v1689_v54  ;;  %v1721_v52 = vadd.f32 %v4636_v33, %v1691_v56  ;;  %v1516_v3 = vrot.slane %v1315_v62, 6  ;;  %v1522_v6 = vrot.slane %v1396_v49, 6 }
 0x158   : > { %1742 = vst [vmem:[%s4646_s10 + $0x80] sm:$0x3f] %v1718_v59  ;;  %1744 = vst [vmem:[%s4646_s10 + $0x90] sm:$0x3f] %v1720_v60  ;;  %v1514_v53 = vsel %vm1451_vm2, %v1512_v45, %v1513_v48  ;;  %v1520_v7 = vsel %vm1451_vm2, %v1518_v47, %v1519_v61 }
 0x159   : > { %1743 = vst [vmem:[%s4646_s10 + $0x88] sm:$0x3f] %v1719_v2  ;;  %1745 = vst [vmem:[%s4646_s10 + $0x98] sm:$0x3f] %v1721_v52  ;;  %v1692_v8 = vadd.f32 %v1642_v32, %v1514_v53  ;;  %v1694_v9 = vadd.f32 %v1648_v36, %v1520_v7  ;;  %v1517_v10 = vsel %vm1451_vm2, %v1515_v51, %v1516_v3  ;;  %v1319_v12 = vpop.f32.mrb[34].mxu0  ;;  %v1400_v13 = vpop.f32.mrb[34].mxu1 }
 0x15a   : > { %v1523_v11 = vsel %vm1451_vm2, %v1521_v55, %v1522_v6  ;;  %v1693_v63 = vadd.f32 %v1645_v37, %v1517_v10  ;;  %v1320_v14 = vpop.f32.mrb[35].mxu0  ;;  %v1401_v4 = vpop.f32.mrb[35].mxu1 }
 0x15b   : > { %v1695_v1 = vadd.f32 %v1651_v40, %v1523_v11  ;;  %v1722_v5 = vadd.f32 %v4636_v33, %v1692_v8  ;;  %v1724_v16 = vadd.f32 %v4636_v33, %v1694_v9 }
 0x15c   : > { %v1723_v20 = vadd.f32 %v4636_v33, %v1693_v63 }
 0x15d   : > { %v1725_v21 = vadd.f32 %v4636_v33, %v1695_v1  ;;  %1746 = vst [vmem:[%s4646_s10 + $0xa0] sm:$0x3f] %v1722_v5  ;;  %1748 = vst [vmem:[%s4646_s10 + $0xb0] sm:$0x3f] %v1724_v16  ;;  %v1845_v22 = vpop.f32.mrb[36].mxu0  ;;  %v1922_v23 = vpop.f32.mrb[36].mxu1 }
 0x15e   : > { %1747 = vst [vmem:[%s4646_s10 + $0xa8] sm:$0x3f] %v1723_v20  ;;  %v2533_v24 = vadd.f32 %v4746_v17, %v1845_v22  ;;  %v2535_v25 = vadd.f32 %v4746_v17, %v1922_v23  ;;  %v1847_v26 = vpop.f32.mrb[37].mxu0  ;;  %v1924_v27 = vpop.f32.mrb[37].mxu1  ;;  %v2463_v18 = vrot.slane %v1845_v22, 6  ;;  %v2469_v19 = vrot.slane %v1922_v23, 6 }
 0x15f   : > { %1749 = vst [vmem:[%s4646_s10 + $0xb8] sm:$0x3f] %v1725_v21  ;;  %v2534_v15 = vadd.f32 %v4746_v17, %v1847_v26  ;;  %v2536_v0 = vadd.f32 %v4746_v17, %v1924_v27  ;;  %v2466_v36 = vrot.slane %v1847_v26, 6  ;;  %v2472_v37 = vrot.slane %v1924_v27, 6 }
 0x160   : > { %3831 = vst [vmem:[%s4646_s10 + $0xc0] sm:$0x3f] %v2533_v24  ;;  %3833 = vst [vmem:[%s4646_s10 + $0xd0] sm:$0x3f] %v2535_v25 }
 0x161   : > { %3832 = vst [vmem:[%s4646_s10 + $0xc8] sm:$0x3f] %v2534_v15  ;;  %3834 = vst [vmem:[%s4646_s10 + $0xd8] sm:$0x3f] %v2536_v0  ;;  %v1851_v33 = vpop.f32.mrb[38].mxu0  ;;  %v1928_v28 = vpop.f32.mrb[38].mxu1 }
 0x162   : > { %v2464_v29 = vrot.slane %v1851_v33, 6  ;;  %v2470_v30 = vrot.slane %v1928_v28, 6  ;;  %v1853_v31 = vpop.f32.mrb[39].mxu0  ;;  %v1930_v32 = vpop.f32.mrb[39].mxu1 }
 0x163   : > { %v2467_v40 = vrot.slane %v1853_v31, 6  ;;  %v2473_v41 = vrot.slane %v1930_v32, 6 }
 0x164   : > { %v2465_v42 = vsel %vm1451_vm2, %v2463_v18, %v2464_v29  ;;  %v2471_v43 = vsel %vm1451_vm2, %v2469_v19, %v2470_v30 }
 0x165   : > { %v2537_v34 = vadd.f32 %v4746_v17, %v2465_v42  ;;  %v2539_v35 = vadd.f32 %v4746_v17, %v2471_v43  ;;  %v2468_v44 = vsel %vm1451_vm2, %v2466_v36, %v2467_v40  ;;  %v2474_v38 = vsel %vm1451_vm2, %v2472_v37, %v2473_v41  ;;  %v2011_v39 = vpop.f32.mrb[40].mxu0  ;;  %v2088_v45 = vpop.f32.mrb[40].mxu1 }
 0x166   : > { %v2538_v46 = vadd.f32 %v4746_v17, %v2468_v44  ;;  %v2540_v47 = vadd.f32 %v4746_v17, %v2474_v38  ;;  %v2541_v50 = vadd.f32 %v4746_v17, %v2011_v39  ;;  %v2013_v51 = vpop.f32.mrb[41].mxu0  ;;  %v2090_v54 = vpop.f32.mrb[41].mxu1  ;;  %v2543_v55 = vadd.f32 %v4746_v17, %v2088_v45 }
 0x167   : > { %3835 = vst [vmem:[%s4646_s10 + $0xe0] sm:$0x3f] %v2537_v34  ;;  %3837 = vst [vmem:[%s4646_s10 + $0xf0] sm:$0x3f] %v2539_v35  ;;  %v2542_v56 = vadd.f32 %v4746_v17, %v2013_v51  ;;  %v2544_v57 = vadd.f32 %v4746_v17, %v2090_v54  ;;  %v2475_v60 = vrot.slane %v2011_v39, 6  ;;  %v2481_v48 = vrot.slane %v2088_v45, 6 }
 0x168   : > { %3836 = vst [vmem:[%s4646_s10 + $0xe8] sm:$0x3f] %v2538_v46  ;;  %3838 = vst [vmem:[%s4646_s10 + $0xf8] sm:$0x3f] %v2540_v47  ;;  %v2478_v52 = vrot.slane %v2013_v51, 6  ;;  %v2484_v3 = vrot.slane %v2090_v54, 6 }
 0x169   : > { %3839 = vst [vmem:[%s4646_s10 + $0x100] sm:$0x3f] %v2541_v50  ;;  %3841 = vst [vmem:[%s4646_s10 + $0x110] sm:$0x3f] %v2543_v55  ;;  %v2017_v58 = vpop.f32.mrb[42].mxu0  ;;  %v2094_v59 = vpop.f32.mrb[42].mxu1 }
 0x16a   : > { %3840 = vst [vmem:[%s4646_s10 + $0x108] sm:$0x3f] %v2542_v56  ;;  %3842 = vst [vmem:[%s4646_s10 + $0x118] sm:$0x3f] %v2544_v57  ;;  %v2476_v61 = vrot.slane %v2017_v58, 6  ;;  %v2482_v62 = vrot.slane %v2094_v59, 6 }
 0x16b   : > { %v2019_v49 = vpop.f32.mrb[43].mxu0  ;;  %v2096_v2 = vpop.f32.mrb[43].mxu1 }
 0x16c   : > { %v2479_v6 = vrot.slane %v2019_v49, 6  ;;  %v2485_v53 = vrot.slane %v2096_v2, 6  ;;  %v2477_v7 = vsel %vm1451_vm2, %v2475_v60, %v2476_v61  ;;  %v2483_v8 = vsel %vm1451_vm2, %v2481_v48, %v2482_v62  ;;  %v4824_v2 = vpop.permute.xlu1 %3310 }
 0x16d   : > { %v2545_v9 = vadd.f32 %v4746_v17, %v2477_v7  ;;  %v2547_v10 = vadd.f32 %v4746_v17, %v2483_v8  ;;  %v2177_v13 = vpop.f32.mrb[44].mxu0  ;;  %v2254_v63 = vpop.f32.mrb[44].mxu1 }
 0x16e   : > { %v2480_v11 = vsel %vm1451_vm2, %v2478_v52, %v2479_v6  ;;  %v2486_v12 = vsel %vm1451_vm2, %v2484_v3, %v2485_v53  ;;  %v2549_v4 = vadd.f32 %v4746_v17, %v2177_v13  ;;  %v2179_v5 = vpop.f32.mrb[45].mxu0  ;;  %v2256_v16 = vpop.f32.mrb[45].mxu1  ;;  %v2551_v20 = vadd.f32 %v4746_v17, %v2254_v63 }
 0x16f   : > { %v2546_v1 = vadd.f32 %v4746_v17, %v2480_v11  ;;  %v2548_v14 = vadd.f32 %v4746_v17, %v2486_v12  ;;  %3843 = vst [vmem:[%s4646_s10 + $0x120] sm:$0x3f] %v2545_v9  ;;  %3845 = vst [vmem:[%s4646_s10 + $0x130] sm:$0x3f] %v2547_v10  ;;  %v2550_v21 = vadd.f32 %v4746_v17, %v2179_v5  ;;  %v2487_v25 = vrot.slane %v2177_v13, 6 }
 0x170   : > { %3847 = vst [vmem:[%s4646_s10 + $0x140] sm:$0x3f] %v2549_v4  ;;  %v2552_v22 = vadd.f32 %v4746_v17, %v2256_v16  ;;  %3849 = vst [vmem:[%s4646_s10 + $0x150] sm:$0x3f] %v2551_v20  ;;  %v2493_v26 = vrot.slane %v2254_v63, 6  ;;  %v2490_v28 = vrot.slane %v2179_v5, 6 }
 0x171   : > { %3844 = vst [vmem:[%s4646_s10 + $0x128] sm:$0x3f] %v2546_v1  ;;  %3846 = vst [vmem:[%s4646_s10 + $0x138] sm:$0x3f] %v2548_v14  ;;  %v2183_v23 = vpop.f32.mrb[46].mxu0  ;;  %v2260_v24 = vpop.f32.mrb[46].mxu1 }
 0x172   : > { %3848 = vst [vmem:[%s4646_s10 + $0x148] sm:$0x3f] %v2550_v21  ;;  %3850 = vst [vmem:[%s4646_s10 + $0x158] sm:$0x3f] %v2552_v22  ;;  %v2488_v27 = vrot.slane %v2183_v23, 6  ;;  %v2494_v15 = vrot.slane %v2260_v24, 6 }
 0x173   : > { %v2185_v0 = vpop.f32.mrb[47].mxu0  ;;  %v2262_v33 = vpop.f32.mrb[47].mxu1  ;;  %v2496_v18 = vrot.slane %v2256_v16, 6 }
 0x174   : > { %v2491_v19 = vrot.slane %v2185_v0, 6  ;;  %v2497_v29 = vrot.slane %v2262_v33, 6  ;;  %v2489_v30 = vsel %vm1451_vm2, %v2487_v25, %v2488_v27  ;;  %v2495_v31 = vsel %vm1451_vm2, %v2493_v26, %v2494_v15 }
 0x175   : > { %v2553_v32 = vadd.f32 %v4746_v17, %v2489_v30  ;;  %v2555_v36 = vadd.f32 %v4746_v17, %v2495_v31  ;;  %v2343_v41 = vpop.f32.mrb[48].mxu0  ;;  %v2420_v42 = vpop.f32.mrb[48].mxu1 }
 0x176   : > { %v2492_v37 = vsel %vm1451_vm2, %v2490_v28, %v2491_v19  ;;  %v2498_v40 = vsel %vm1451_vm2, %v2496_v18, %v2497_v29  ;;  %v2557_v35 = vadd.f32 %v4746_v17, %v2343_v41  ;;  %v2345_v44 = vpop.f32.mrb[49].mxu0  ;;  %v2422_v38 = vpop.f32.mrb[49].mxu1  ;;  %v2559_v39 = vadd.f32 %v4746_v17, %v2420_v42 }
 0x177   : > { %v2554_v43 = vadd.f32 %v4746_v17, %v2492_v37  ;;  %v2556_v34 = vadd.f32 %v4746_v17, %v2498_v40  ;;  %3851 = vst [vmem:[%s4646_s10 + $0x160] sm:$0x3f] %v2553_v32  ;;  %3853 = vst [vmem:[%s4646_s10 + $0x170] sm:$0x3f] %v2555_v36  ;;  %v2558_v45 = vadd.f32 %v4746_v17, %v2345_v44  ;;  %v2499_v51 = vrot.slane %v2343_v41, 6 }
 0x178   : > { %3855 = vst [vmem:[%s4646_s10 + $0x180] sm:$0x3f] %v2557_v35  ;;  %v2560_v46 = vadd.f32 %v4746_v17, %v2422_v38  ;;  %3857 = vst [vmem:[%s4646_s10 + $0x190] sm:$0x3f] %v2559_v39  ;;  %v2505_v54 = vrot.slane %v2420_v42, 6  ;;  %v2502_v59 = vrot.slane %v2345_v44, 6 }
 0x179   : > { %3852 = vst [vmem:[%s4646_s10 + $0x168] sm:$0x3f] %v2554_v43  ;;  %3854 = vst [vmem:[%s4646_s10 + $0x178] sm:$0x3f] %v2556_v34  ;;  %v2349_v47 = vpop.f32.mrb[50].mxu0  ;;  %v2426_v50 = vpop.f32.mrb[50].mxu1 }
 0x17a   : > { %3856 = vst [vmem:[%s4646_s10 + $0x188] sm:$0x3f] %v2558_v45  ;;  %3858 = vst [vmem:[%s4646_s10 + $0x198] sm:$0x3f] %v2560_v46  ;;  %v2500_v55 = vrot.slane %v2349_v47, 6  ;;  %v2506_v56 = vrot.slane %v2426_v50, 6 }
 0x17b   : > { %v2351_v57 = vpop.f32.mrb[51].mxu0  ;;  %v2428_v58 = vpop.f32.mrb[51].mxu1  ;;  %v2508_v60 = vrot.slane %v2422_v38, 6 }
 0x17c   : > { %v2503_v48 = vrot.slane %v2351_v57, 6  ;;  %v2509_v61 = vrot.slane %v2428_v58, 6  ;;  %v2501_v62 = vsel %vm1451_vm2, %v2499_v51, %v2500_v55  ;;  %v2507_v49 = vsel %vm1451_vm2, %v2505_v54, %v2506_v56 }
 0x17d   : > { %v2561_v52 = vadd.f32 %v4746_v17, %v2501_v62  ;;  %v2563_v3 = vadd.f32 %v4746_v17, %v2507_v49  ;;  %v2695_v7 = vpop.f32.mrb[52].mxu0  ;;  %v2778_v8 = vpop.f32.mrb[52].mxu1 }
 0x17e   : > { %v2504_v6 = vsel %vm1451_vm2, %v2502_v59, %v2503_v48  ;;  %v2510_v53 = vsel %vm1451_vm2, %v2508_v60, %v2509_v61  ;;  %v2697_v11 = vpop.f32.mrb[53].mxu0  ;;  %v2780_v12 = vpop.f32.mrb[53].mxu1  ;;  %v3313_v13 = vadd.f32 %v4824_v2, %v2695_v7  ;;  %v3315_v63 = vadd.f32 %v4824_v2, %v2778_v8 }
 0x17f   : > { %v2562_v9 = vadd.f32 %v4746_v17, %v2504_v6  ;;  %v2564_v10 = vadd.f32 %v4746_v17, %v2510_v53  ;;  %3859 = vst [vmem:[%s4646_s10 + $0x1a0] sm:$0x3f] %v2561_v52  ;;  %3861 = vst [vmem:[%s4646_s10 + $0x1b0] sm:$0x3f] %v2563_v3  ;;  %v3314_v1 = vadd.f32 %v4824_v2, %v2697_v11  ;;  %v3175_v4 = vrot.slane %v2695_v7, 6 }
 0x180   : > { %v3316_v14 = vadd.f32 %v4824_v2, %v2780_v12  ;;  %v3181_v5 = vrot.slane %v2778_v8, 6  ;;  %3899 = vst [vmem:[%s4646_s10 + $0x1c0] sm:$0x3f] %v3313_v13  ;;  %3901 = vst [vmem:[%s4646_s10 + $0x1d0] sm:$0x3f] %v3315_v63  ;;  %v3178_v20 = vrot.slane %v2697_v11, 6 }
 0x181   : > { %3860 = vst [vmem:[%s4646_s10 + $0x1a8] sm:$0x3f] %v2562_v9  ;;  %3862 = vst [vmem:[%s4646_s10 + $0x1b8] sm:$0x3f] %v2564_v10  ;;  %v2701_v17 = vpop.f32.mrb[54].mxu0  ;;  %v2784_v16 = vpop.f32.mrb[54].mxu1 }
 0x182   : > { %3900 = vst [vmem:[%s4646_s10 + $0x1c8] sm:$0x3f] %v3314_v1  ;;  %v3184_v21 = vrot.slane %v2780_v12, 6  ;;  %3902 = vst [vmem:[%s4646_s10 + $0x1d8] sm:$0x3f] %v3316_v14  ;;  %v3176_v22 = vrot.slane %v2701_v17, 6 }
 0x183   : > { %v3182_v23 = vrot.slane %v2784_v16, 6  ;;  %v2703_v24 = vpop.f32.mrb[55].mxu0  ;;  %v2786_v25 = vpop.f32.mrb[55].mxu1  ;;  %v3235_v26 = vrot.slane %v2701_v17, 4  ;;  %v3241_v27 = vrot.slane %v2784_v16, 4 }
 0x184   : > { %v3179_v15 = vrot.slane %v2703_v24, 6  ;;  %v3185_v0 = vrot.slane %v2786_v25, 6  ;;  %v3177_v33 = vsel %vm1451_vm2, %v3175_v4, %v3176_v22  ;;  %v3238_v18 = vrot.slane %v2703_v24, 4 }
 0x185   : > { %v3183_v28 = vsel %vm1451_vm2, %v3181_v5, %v3182_v23  ;;  %v3244_v19 = vrot.slane %v2786_v25, 4  ;;  %v3317_v29 = vadd.f32 %v4824_v2, %v3177_v33  ;;  %v2707_v36 = vpop.f32.mrb[56].mxu0  ;;  %v2790_v37 = vpop.f32.mrb[56].mxu1 }
 0x186   : > { %v3319_v30 = vadd.f32 %v4824_v2, %v3183_v28  ;;  %v3180_v31 = vsel %vm1451_vm2, %v3178_v20, %v3179_v15  ;;  %v3186_v32 = vsel %vm1451_vm2, %v3184_v21, %v3185_v0  ;;  %v3236_v42 = vrot.slane %v2707_v36, 4  ;;  %v2709_v34 = vpop.f32.mrb[57].mxu0  ;;  %v2792_v35 = vpop.f32.mrb[57].mxu1 }
 0x187   : > { %v3318_v40 = vadd.f32 %v4824_v2, %v3180_v31  ;;  %v3320_v41 = vadd.f32 %v4824_v2, %v3186_v32  ;;  %v3283_v43 = vrot.slane %v2707_v36, 2  ;;  %3903 = vst [vmem:[%s4646_s10 + $0x1e0] sm:$0x3f] %v3317_v29  ;;  %v3242_v44 = vrot.slane %v2790_v37, 4 }
 0x188   : > { %3905 = vst [vmem:[%s4646_s10 + $0x1f0] sm:$0x3f] %v3319_v30  ;;  %v3285_v38 = vrot.slane %v2790_v37, 2  ;;  %v3239_v39 = vrot.slane %v2709_v34, 4  ;;  %v3284_v45 = vrot.slane %v2709_v34, 2  ;;  %v3237_v46 = vsel %vm342_vm0, %v3235_v26, %v3236_v42 }
 0x189   : > { %3904 = vst [vmem:[%s4646_s10 + $0x1e8] sm:$0x3f] %v3318_v40  ;;  %3906 = vst [vmem:[%s4646_s10 + $0x1f8] sm:$0x3f] %v3320_v41  ;;  %v3325_v47 = vadd.f32 %v4824_v2, %v3283_v43  ;;  %v3245_v50 = vrot.slane %v2792_v35, 4  ;;  %v3286_v51 = vrot.slane %v2792_v35, 2  ;;  %v3321_v54 = vadd.f32 %v4824_v2, %v3237_v46 }
 0x18a   : > { %v3243_v55 = vsel %vm342_vm0, %v3241_v27, %v3242_v44  ;;  %v3327_v56 = vadd.f32 %v4824_v2, %v3285_v38  ;;  %v3240_v57 = vsel %vm342_vm0, %v3238_v18, %v3239_v39  ;;  %v2873_v58 = vpop.f32.mrb[58].mxu0  ;;  %v2956_v59 = vpop.f32.mrb[58].mxu1  ;;  %v3326_v61 = vadd.f32 %v4824_v2, %v3284_v45 }
 0x18b   : > { %3911 = vst [vmem:[%s4646_s10 + $0x220] sm:$0x3f] %v3325_v47  ;;  %v3323_v60 = vadd.f32 %v4824_v2, %v3243_v55  ;;  %v3322_v48 = vadd.f32 %v4824_v2, %v3240_v57  ;;  %v3246_v62 = vsel %vm342_vm0, %v3244_v19, %v3245_v50  ;;  %v2875_v49 = vpop.f32.mrb[59].mxu0  ;;  %v2958_v52 = vpop.f32.mrb[59].mxu1  ;;  %3907 = vst [vmem:[%s4646_s10 + $0x200] sm:$0x3f] %v3321_v54 }
 0x18c   : > { %3913 = vst [vmem:[%s4646_s10 + $0x230] sm:$0x3f] %v3327_v56  ;;  %v3324_v3 = vadd.f32 %v4824_v2, %v3246_v62  ;;  %v3328_v6 = vadd.f32 %v4824_v2, %v3286_v51  ;;  %v3329_v53 = vadd.f32 %v4824_v2, %v2873_v58  ;;  %3912 = vst [vmem:[%s4646_s10 + $0x228] sm:$0x3f] %v3326_v61  ;;  %v3187_v9 = vrot.slane %v2873_v58, 6 }
 0x18d   : > { %3909 = vst [vmem:[%s4646_s10 + $0x210] sm:$0x3f] %v3323_v60  ;;  %3908 = vst [vmem:[%s4646_s10 + $0x208] sm:$0x3f] %v3322_v48  ;;  %v3331_v7 = vadd.f32 %v4824_v2, %v2956_v59  ;;  %v3330_v8 = vadd.f32 %v4824_v2, %v2875_v49  ;;  %v3193_v10 = vrot.slane %v2956_v59, 6  ;;  %v3332_v11 = vadd.f32 %v4824_v2, %v2958_v52  ;;  %v2879_v12 = vpop.f32.mrb[60].mxu0 }
 0x18e   : > { %3910 = vst [vmem:[%s4646_s10 + $0x218] sm:$0x3f] %v3324_v3  ;;  %3914 = vst [vmem:[%s4646_s10 + $0x238] sm:$0x3f] %v3328_v6  ;;  %v2962_v13 = vpop.f32.mrb[60].mxu1  ;;  %v3190_v63 = vrot.slane %v2875_v49, 6 }
 0x18f   : > { %3915 = vst [vmem:[%s4646_s10 + $0x240] sm:$0x3f] %v3329_v53  ;;  %3917 = vst [vmem:[%s4646_s10 + $0x250] sm:$0x3f] %v3331_v7  ;;  %v3196_v1 = vrot.slane %v2958_v52, 6  ;;  %v3188_v14 = vrot.slane %v2879_v12, 6 }
 0x190   : > { %3916 = vst [vmem:[%s4646_s10 + $0x248] sm:$0x3f] %v3330_v8  ;;  %v3194_v4 = vrot.slane %v2962_v13, 6  ;;  %v2881_v5 = vpop.f32.mrb[61].mxu0  ;;  %v2964_v17 = vpop.f32.mrb[61].mxu1  ;;  %v3247_v16 = vrot.slane %v2879_v12, 4 }
 0x191   : > { %3918 = vst [vmem:[%s4646_s10 + $0x258] sm:$0x3f] %v3332_v11  ;;  %v3253_v20 = vrot.slane %v2962_v13, 4  ;;  %v3191_v21 = vrot.slane %v2881_v5, 6  ;;  %v3197_v22 = vrot.slane %v2964_v17, 6  ;;  %v3189_v23 = vsel %vm1451_vm2, %v3187_v9, %v3188_v14  ;;  %v2885_v28 = vpop.f32.mrb[62].mxu0 }
 0x192   : > { %v3195_v24 = vsel %vm1451_vm2, %v3193_v10, %v3194_v4  ;;  %v3250_v25 = vrot.slane %v2881_v5, 4  ;;  %v3256_v26 = vrot.slane %v2964_v17, 4  ;;  %v3333_v27 = vadd.f32 %v4824_v2, %v3189_v23  ;;  %v2968_v18 = vpop.f32.mrb[62].mxu1  ;;  %v2887_v32 = vpop.f32.mrb[63].mxu0 }
 0x193   : > { %v3335_v15 = vadd.f32 %v4824_v2, %v3195_v24  ;;  %v3192_v0 = vsel %vm1451_vm2, %v3190_v63, %v3191_v21  ;;  %v3198_v33 = vsel %vm1451_vm2, %v3196_v1, %v3197_v22  ;;  %v3248_v30 = vrot.slane %v2885_v28, 4  ;;  %v2970_v36 = vpop.f32.mrb[63].mxu1 }
 0x194   : > { %v3334_v19 = vadd.f32 %v4824_v2, %v3192_v0  ;;  %v3336_v29 = vadd.f32 %v4824_v2, %v3198_v33  ;;  %v3287_v31 = vrot.slane %v2885_v28, 2  ;;  %3919 = vst [vmem:[%s4646_s10 + $0x260] sm:$0x3f] %v3333_v27  ;;  %v3254_v37 = vrot.slane %v2968_v18, 4 }
 0x195   : > { %3921 = vst [vmem:[%s4646_s10 + $0x270] sm:$0x3f] %v3335_v15  ;;  %v3289_v40 = vrot.slane %v2968_v18, 2  ;;  %v3251_v41 = vrot.slane %v2887_v32, 4  ;;  %v3288_v42 = vrot.slane %v2887_v32, 2  ;;  %v3249_v43 = vsel %vm342_vm0, %v3247_v16, %v3248_v30  ;;  %v3051_v47 = vpop.f32.mrb[64].mxu0 }
 0x196   : > { %3920 = vst [vmem:[%s4646_s10 + $0x268] sm:$0x3f] %v3334_v19  ;;  %3922 = vst [vmem:[%s4646_s10 + $0x278] sm:$0x3f] %v3336_v29  ;;  %v3341_v34 = vadd.f32 %v4824_v2, %v3287_v31  ;;  %v3257_v35 = vrot.slane %v2970_v36, 4  ;;  %v3290_v44 = vrot.slane %v2970_v36, 2  ;;  %v3337_v38 = vadd.f32 %v4824_v2, %v3249_v43 }
 0x197   : > { %v3255_v39 = vsel %vm342_vm0, %v3253_v20, %v3254_v37  ;;  %v3343_v45 = vadd.f32 %v4824_v2, %v3289_v40  ;;  %v3252_v46 = vsel %vm342_vm0, %v3250_v25, %v3251_v41  ;;  %v3134_v50 = vpop.f32.mrb[64].mxu1  ;;  %v3342_v55 = vadd.f32 %v4824_v2, %v3288_v42  ;;  %v3053_v57 = vpop.f32.mrb[65].mxu0 }
 0x198   : > { %3927 = vst [vmem:[%s4646_s10 + $0x2a0] sm:$0x3f] %v3341_v34  ;;  %v3339_v51 = vadd.f32 %v4824_v2, %v3255_v39  ;;  %v3338_v54 = vadd.f32 %v4824_v2, %v3252_v46  ;;  %v3258_v56 = vsel %vm342_vm0, %v3256_v26, %v3257_v35  ;;  %v3136_v58 = vpop.f32.mrb[65].mxu1  ;;  %3923 = vst [vmem:[%s4646_s10 + $0x280] sm:$0x3f] %v3337_v38  ;;  %v3199_v49 = vrot.slane %v3051_v47, 6 }
 0x199   : > { %3929 = vst [vmem:[%s4646_s10 + $0x2b0] sm:$0x3f] %v3343_v45  ;;  %v3340_v59 = vadd.f32 %v4824_v2, %v3258_v56  ;;  %v3344_v60 = vadd.f32 %v4824_v2, %v3290_v44  ;;  %v3345_v48 = vadd.f32 %v4824_v2, %v3051_v47  ;;  %3928 = vst [vmem:[%s4646_s10 + $0x2a8] sm:$0x3f] %v3342_v55  ;;  %v3205_v52 = vrot.slane %v3134_v50, 6  ;;  %v3057_v6 = vpop.f32.mrb[66].mxu0 }
 0x19a   : > { %3925 = vst [vmem:[%s4646_s10 + $0x290] sm:$0x3f] %v3339_v51  ;;  %3924 = vst [vmem:[%s4646_s10 + $0x288] sm:$0x3f] %v3338_v54  ;;  %v3347_v61 = vadd.f32 %v4824_v2, %v3134_v50  ;;  %v3346_v62 = vadd.f32 %v4824_v2, %v3053_v57  ;;  %v3348_v3 = vadd.f32 %v4824_v2, %v3136_v58  ;;  %v3140_v53 = vpop.f32.mrb[66].mxu1  ;;  %v3202_v7 = vrot.slane %v3053_v57, 6 }
 0x19b   : > { %3926 = vst [vmem:[%s4646_s10 + $0x298] sm:$0x3f] %v3340_v59  ;;  %3930 = vst [vmem:[%s4646_s10 + $0x2b8] sm:$0x3f] %v3344_v60  ;;  %v3208_v8 = vrot.slane %v3136_v58, 6  ;;  %v3200_v9 = vrot.slane %v3057_v6, 6 }
 0x19c   : > { %3931 = vst [vmem:[%s4646_s10 + $0x2c0] sm:$0x3f] %v3345_v48  ;;  %3933 = vst [vmem:[%s4646_s10 + $0x2d0] sm:$0x3f] %v3347_v61  ;;  %v3206_v10 = vrot.slane %v3140_v53, 6  ;;  %v3059_v11 = vpop.f32.mrb[67].mxu0 }
 0x19d   : > { %3932 = vst [vmem:[%s4646_s10 + $0x2c8] sm:$0x3f] %v3346_v62  ;;  %v3142_v12 = vpop.f32.mrb[67].mxu1  ;;  %3934 = vst [vmem:[%s4646_s10 + $0x2d8] sm:$0x3f] %v3348_v3  ;;  %v3259_v13 = vrot.slane %v3057_v6, 4  ;;  %v3201_v4 = vsel %vm1451_vm2, %v3199_v49, %v3200_v9 }
 0x19e   : > { %v3265_v63 = vrot.slane %v3140_v53, 4  ;;  %v3203_v1 = vrot.slane %v3059_v11, 6  ;;  %v3209_v14 = vrot.slane %v3142_v12, 6  ;;  %v3207_v5 = vsel %vm1451_vm2, %v3205_v52, %v3206_v10  ;;  %v3063_v24 = vpop.f32.mrb[68].mxu0  ;;  %v3146_v25 = vpop.f32.mrb[68].mxu1  ;;  %v3436_v46 = vld [vmem:[%s4646_s10 + $0x8] sm:$0xff] (%p5215_p7) }
 0x19f   : > { %v3262_v17 = vrot.slane %v3059_v11, 4  ;;  %v3268_v16 = vrot.slane %v3142_v12, 4  ;;  %v3349_v20 = vadd.f32 %v4824_v2, %v3201_v4  ;;  %v3351_v21 = vadd.f32 %v4824_v2, %v3207_v5  ;;  %v3065_v33 = vpop.f32.mrb[69].mxu0  ;;  %v3148_v28 = vpop.f32.mrb[69].mxu1  ;;  %v3438_v47 = vld [vmem:[%s4646_s10 + $0x10] sm:$0xff] (%p5215_p7)  ;;  %v3440_v50 = vld [vmem:[%s4646_s10 + $0x18] sm:$0xff] (%p5215_p7) }
 0x1a0   : > { %v3204_v22 = vsel %vm1451_vm2, %v3202_v7, %v3203_v1  ;;  %v3210_v23 = vsel %vm1451_vm2, %v3208_v8, %v3209_v14  ;;  %v3260_v15 = vrot.slane %v3063_v24, 4  ;;  %v3291_v0 = vrot.slane %v3063_v24, 2  ;;  %v3442_v51 = vld [vmem:[%s4646_s10 + $0x20] sm:$0xff] (%p5215_p7)  ;;  %v3444_v54 = vld [vmem:[%s4646_s10 + $0x28] sm:$0xff] (%p5215_p7)  ;;  %v3446_v55 = vld [vmem:[%s4646_s10 + $0x30] sm:$0xff] (%p5215_p7)  ;;  %3437 = vst [vmem:[%s4975_s28 + $0x8] sm:$0xff] (%p5215_p7), %v3436_v46 }
 0x1a1   : > { %v3350_v26 = vadd.f32 %v4824_v2, %v3204_v22  ;;  %v3352_v27 = vadd.f32 %v4824_v2, %v3210_v23  ;;  %3935 = vst [vmem:[%s4646_s10 + $0x2e0] sm:$0x3f] %v3349_v20  ;;  %3937 = vst [vmem:[%s4646_s10 + $0x2f0] sm:$0x3f] %v3351_v21  ;;  %v3266_v18 = vrot.slane %v3146_v25, 4  ;;  %v3293_v19 = vrot.slane %v3146_v25, 2 }
 0x1a2   : > { %v3263_v29 = vrot.slane %v3065_v33, 4  ;;  %v3292_v30 = vrot.slane %v3065_v33, 2  ;;  %v3261_v31 = vsel %vm342_vm0, %v3259_v13, %v3260_v15  ;;  %v3357_v32 = vadd.f32 %v4824_v2, %v3291_v0  ;;  %3416 = sbr.rel (!%p5215_p7) target bundleno = 476 (0x1dc), region = 56  ;;  %v3448_v56 = vld [vmem:[%s4646_s10 + $0x38] sm:$0xff] (%p5215_p7)  ;;  %v3450_v57 = vld [vmem:[%s4646_s10 + $0x40] sm:$0xff] (%p5215_p7)  ;;  %v3452_v58 = vld [vmem:[%s4646_s10 + $0x48] sm:$0xff] (%p5215_p7) }
 0x1a3   : > { %3936 = vst [vmem:[%s4646_s10 + $0x2e8] sm:$0x3f] %v3350_v26  ;;  %3938 = vst [vmem:[%s4646_s10 + $0x2f8] sm:$0x3f] %v3352_v27  ;;  %v3269_v36 = vrot.slane %v3148_v28, 4  ;;  %v3294_v37 = vrot.slane %v3148_v28, 2  ;;  %v3353_v40 = vadd.f32 %v4824_v2, %v3261_v31  ;;  %v3267_v41 = vsel %vm342_vm0, %v3265_v63, %v3266_v18 }
 0x1a4   : > { %v3359_v42 = vadd.f32 %v4824_v2, %v3293_v19  ;;  %v3264_v43 = vsel %vm342_vm0, %v3262_v17, %v3263_v29  ;;  %3943 = vst [vmem:[%s4646_s10 + $0x320] sm:$0x3f] %v3357_v32  ;;  %v3355_v34 = vadd.f32 %v4824_v2, %v3267_v41  ;;  %v3358_v44 = vadd.f32 %v4824_v2, %v3292_v30  ;;  %v3454_v59 = vld [vmem:[%s4646_s10 + $0x50] sm:$0xff] (%p5215_p7)  ;;  %v3456_v60 = vld [vmem:[%s4646_s10 + $0x58] sm:$0xff] (%p5215_p7)  ;;  %v3458_v48 = vld [vmem:[%s4646_s10 + $0x60] sm:$0xff] (%p5215_p7) }
 0x1a5   : > { %v3354_v35 = vadd.f32 %v4824_v2, %v3264_v43  ;;  %v3270_v38 = vsel %vm342_vm0, %v3268_v16, %v3269_v36  ;;  %3939 = vst [vmem:[%s4646_s10 + $0x300] sm:$0x3f] %v3353_v40  ;;  %v3360_v45 = vadd.f32 %v4824_v2, %v3294_v37  ;;  %v3460_v61 = vld [vmem:[%s4646_s10 + $0x68] sm:$0xff] (%p5215_p7)  ;;  %v3462_v62 = vld [vmem:[%s4646_s10 + $0x70] sm:$0xff] (%p5215_p7)  ;;  %3439 = vst [vmem:[%s4975_s28 + $0x10] sm:$0xff] (%p5215_p7), %v3438_v47 }
 0x1a6   : > { %3945 = vst [vmem:[%s4646_s10 + $0x330] sm:$0x3f] %v3359_v42  ;;  %v3356_v39 = vadd.f32 %v4824_v2, %v3270_v38  ;;  %3941 = vst [vmem:[%s4646_s10 + $0x310] sm:$0x3f] %v3355_v34  ;;  %v3434_v2 = vld [vmem:[%s4646_s10] sm:$0xff] (%p5215_p7)  ;;  %v3464_v49 = vld [vmem:[%s4646_s10 + $0x78] sm:$0xff] (%p5215_p7) }
 0x1a7   : > { %3940 = vst [vmem:[%s4646_s10 + $0x308] sm:$0x3f] %v3354_v35  ;;  %3944 = vst [vmem:[%s4646_s10 + $0x328] sm:$0x3f] %v3358_v44  ;;  %v3466_v52 = vld [vmem:[%s4646_s10 + $0x80] sm:$0xff] (%p5215_p7)  ;;  %v3468_v3 = vld [vmem:[%s4646_s10 + $0x88] sm:$0xff] (%p5215_p7) }
 0x1a8   : > { %3942 = vst [vmem:[%s4646_s10 + $0x318] sm:$0x3f] %v3356_v39  ;;  %3946 = vst [vmem:[%s4646_s10 + $0x338] sm:$0x3f] %v3360_v45  ;;  %v3470_v6 = vld [vmem:[%s4646_s10 + $0x90] sm:$0xff] (%p5215_p7)  ;;  %v3472_v53 = vld [vmem:[%s4646_s10 + $0x98] sm:$0xff] (%p5215_p7) }
 0x1a9   : > { %3435 = vst [vmem:[%s4975_s28] sm:$0xff] %v3434_v2  ;;  %3441 = vst [vmem:[%s4975_s28 + $0x18] sm:$0xff] %v3440_v50  ;;  %v3474_v7 = vld [vmem:[%s4646_s10 + $0xa0] sm:$0xff]  ;;  %v3476_v8 = vld [vmem:[%s4646_s10 + $0xa8] sm:$0xff] }
 0x1aa   : > { %3443 = vst [vmem:[%s4975_s28 + $0x40] sm:$0xff] %v3442_v51  ;;  %3445 = vst [vmem:[%s4975_s28 + $0x48] sm:$0xff] %v3444_v54  ;;  %v3478_v9 = vld [vmem:[%s4646_s10 + $0xb0] sm:$0xff]  ;;  %v3480_v10 = vld [vmem:[%s4646_s10 + $0xb8] sm:$0xff] }
 0x1ab   : > { %3447 = vst [vmem:[%s4975_s28 + $0x50] sm:$0xff] %v3446_v55  ;;  %3449 = vst [vmem:[%s4975_s28 + $0x58] sm:$0xff] %v3448_v56  ;;  %v3482_v11 = vld [vmem:[%s4646_s10 + $0xc0] sm:$0xff]  ;;  %v3484_v12 = vld [vmem:[%s4646_s10 + $0xc8] sm:$0xff] }
 0x1ac   : > { %3451 = vst [vmem:[%s4975_s28 + $0x80] sm:$0xff] %v3450_v57  ;;  %3453 = vst [vmem:[%s4975_s28 + $0x88] sm:$0xff] %v3452_v58  ;;  %v3486_v13 = vld [vmem:[%s4646_s10 + $0xd0] sm:$0xff]  ;;  %v3488_v63 = vld [vmem:[%s4646_s10 + $0xd8] sm:$0xff] }
 0x1ad   : > { %3455 = vst [vmem:[%s4975_s28 + $0x90] sm:$0xff] %v3454_v59  ;;  %3457 = vst [vmem:[%s4975_s28 + $0x98] sm:$0xff] %v3456_v60  ;;  %v3490_v1 = vld [vmem:[%s4646_s10 + $0xe0] sm:$0xff]  ;;  %v3492_v14 = vld [vmem:[%s4646_s10 + $0xe8] sm:$0xff] }
 0x1ae   : > { %3459 = vst [vmem:[%s4975_s28 + $0xc0] sm:$0xff] %v3458_v48  ;;  %3461 = vst [vmem:[%s4975_s28 + $0xc8] sm:$0xff] %v3460_v61  ;;  %v3494_v4 = vld [vmem:[%s4646_s10 + $0xf0] sm:$0xff]  ;;  %v3496_v5 = vld [vmem:[%s4646_s10 + $0xf8] sm:$0xff] }
 0x1af   : > { %3463 = vst [vmem:[%s4975_s28 + $0xd0] sm:$0xff] %v3462_v62  ;;  %3465 = vst [vmem:[%s4975_s28 + $0xd8] sm:$0xff] %v3464_v49  ;;  %v3498_v17 = vld [vmem:[%s4646_s10 + $0x100] sm:$0xff]  ;;  %v3500_v16 = vld [vmem:[%s4646_s10 + $0x108] sm:$0xff] }
 0x1b0   : > { %3467 = vst [vmem:[%s4975_s28 + $0x100] sm:$0xff] %v3466_v52  ;;  %3469 = vst [vmem:[%s4975_s28 + $0x108] sm:$0xff] %v3468_v3  ;;  %v3502_v20 = vld [vmem:[%s4646_s10 + $0x110] sm:$0xff]  ;;  %v3504_v21 = vld [vmem:[%s4646_s10 + $0x118] sm:$0xff] }
 0x1b1   : > { %3471 = vst [vmem:[%s4975_s28 + $0x110] sm:$0xff] %v3470_v6  ;;  %3473 = vst [vmem:[%s4975_s28 + $0x118] sm:$0xff] %v3472_v53  ;;  %v3506_v22 = vld [vmem:[%s4646_s10 + $0x120] sm:$0xff]  ;;  %v3508_v23 = vld [vmem:[%s4646_s10 + $0x128] sm:$0xff] }
 0x1b2   : > { %3475 = vst [vmem:[%s4975_s28 + $0x140] sm:$0xff] %v3474_v7  ;;  %3477 = vst [vmem:[%s4975_s28 + $0x148] sm:$0xff] %v3476_v8  ;;  %v3510_v24 = vld [vmem:[%s4646_s10 + $0x130] sm:$0xff]  ;;  %v3512_v25 = vld [vmem:[%s4646_s10 + $0x138] sm:$0xff] }
 0x1b3   : > { %3479 = vst [vmem:[%s4975_s28 + $0x150] sm:$0xff] %v3478_v9  ;;  %3481 = vst [vmem:[%s4975_s28 + $0x158] sm:$0xff] %v3480_v10  ;;  %v3514_v26 = vld [vmem:[%s4646_s10 + $0x140] sm:$0xff]  ;;  %v3516_v27 = vld [vmem:[%s4646_s10 + $0x148] sm:$0xff] }
 0x1b4   : > { %3483 = vst [vmem:[%s4975_s28 + $0x180] sm:$0xff] %v3482_v11  ;;  %3485 = vst [vmem:[%s4975_s28 + $0x188] sm:$0xff] %v3484_v12  ;;  %v3518_v15 = vld [vmem:[%s4646_s10 + $0x150] sm:$0xff]  ;;  %v3520_v0 = vld [vmem:[%s4646_s10 + $0x158] sm:$0xff] }
 0x1b5   : > { %3487 = vst [vmem:[%s4975_s28 + $0x190] sm:$0xff] %v3486_v13  ;;  %3489 = vst [vmem:[%s4975_s28 + $0x198] sm:$0xff] %v3488_v63  ;;  %v3522_v33 = vld [vmem:[%s4646_s10 + $0x160] sm:$0xff]  ;;  %v3524_v28 = vld [vmem:[%s4646_s10 + $0x168] sm:$0xff] }
 0x1b6   : > { %3491 = vst [vmem:[%s4975_s28 + $0x1c0] sm:$0xff] %v3490_v1  ;;  %3493 = vst [vmem:[%s4975_s28 + $0x1c8] sm:$0xff] %v3492_v14  ;;  %v3526_v18 = vld [vmem:[%s4646_s10 + $0x170] sm:$0xff]  ;;  %v3528_v19 = vld [vmem:[%s4646_s10 + $0x178] sm:$0xff] }
 0x1b7   : > { %3495 = vst [vmem:[%s4975_s28 + $0x1d0] sm:$0xff] %v3494_v4  ;;  %3497 = vst [vmem:[%s4975_s28 + $0x1d8] sm:$0xff] %v3496_v5  ;;  %v3530_v29 = vld [vmem:[%s4646_s10 + $0x180] sm:$0xff]  ;;  %v3532_v30 = vld [vmem:[%s4646_s10 + $0x188] sm:$0xff] }
 0x1b8   : > { %3499 = vst [vmem:[%s4975_s28 + $0x200] sm:$0xff] %v3498_v17  ;;  %3501 = vst [vmem:[%s4975_s28 + $0x208] sm:$0xff] %v3500_v16  ;;  %v3534_v31 = vld [vmem:[%s4646_s10 + $0x190] sm:$0xff]  ;;  %v3536_v32 = vld [vmem:[%s4646_s10 + $0x198] sm:$0xff] }
 0x1b9   : > { %3503 = vst [vmem:[%s4975_s28 + $0x210] sm:$0xff] %v3502_v20  ;;  %3505 = vst [vmem:[%s4975_s28 + $0x218] sm:$0xff] %v3504_v21  ;;  %v3538_v36 = vld [vmem:[%s4646_s10 + $0x1a0] sm:$0xff]  ;;  %v3540_v37 = vld [vmem:[%s4646_s10 + $0x1a8] sm:$0xff] }
 0x1ba   : > { %3507 = vst [vmem:[%s4975_s28 + $0x240] sm:$0xff] %v3506_v22  ;;  %3509 = vst [vmem:[%s4975_s28 + $0x248] sm:$0xff] %v3508_v23  ;;  %v3542_v40 = vld [vmem:[%s4646_s10 + $0x1b0] sm:$0xff]  ;;  %v3544_v41 = vld [vmem:[%s4646_s10 + $0x1b8] sm:$0xff] }
 0x1bb   : > { %3511 = vst [vmem:[%s4975_s28 + $0x250] sm:$0xff] %v3510_v24  ;;  %3513 = vst [vmem:[%s4975_s28 + $0x258] sm:$0xff] %v3512_v25  ;;  %v3546_v42 = vld [vmem:[%s4646_s10 + $0x1c0] sm:$0xff]  ;;  %v3548_v43 = vld [vmem:[%s4646_s10 + $0x1c8] sm:$0xff] }
 0x1bc   : > { %3515 = vst [vmem:[%s4975_s28 + $0x280] sm:$0xff] %v3514_v26  ;;  %3517 = vst [vmem:[%s4975_s28 + $0x288] sm:$0xff] %v3516_v27  ;;  %v3550_v34 = vld [vmem:[%s4646_s10 + $0x1d0] sm:$0xff]  ;;  %v3552_v35 = vld [vmem:[%s4646_s10 + $0x1d8] sm:$0xff] }
 0x1bd   : > { %3519 = vst [vmem:[%s4975_s28 + $0x290] sm:$0xff] %v3518_v15  ;;  %3521 = vst [vmem:[%s4975_s28 + $0x298] sm:$0xff] %v3520_v0  ;;  %v3554_v44 = vld [vmem:[%s4646_s10 + $0x1e0] sm:$0xff]  ;;  %v3556_v38 = vld [vmem:[%s4646_s10 + $0x1e8] sm:$0xff] }
 0x1be   : > { %3523 = vst [vmem:[%s4975_s28 + $0x2c0] sm:$0xff] %v3522_v33  ;;  %3525 = vst [vmem:[%s4975_s28 + $0x2c8] sm:$0xff] %v3524_v28  ;;  %v3558_v39 = vld [vmem:[%s4646_s10 + $0x1f0] sm:$0xff]  ;;  %v3560_v45 = vld [vmem:[%s4646_s10 + $0x1f8] sm:$0xff] }
 0x1bf   : > { %3527 = vst [vmem:[%s4975_s28 + $0x2d0] sm:$0xff] %v3526_v18  ;;  %3529 = vst [vmem:[%s4975_s28 + $0x2d8] sm:$0xff] %v3528_v19  ;;  %v3562_v2 = vld [vmem:[%s4646_s10 + $0x200] sm:$0xff]  ;;  %v3564_v46 = vld [vmem:[%s4646_s10 + $0x208] sm:$0xff] }
 0x1c0   : > { %3531 = vst [vmem:[%s4975_s28 + $0x300] sm:$0xff] %v3530_v29  ;;  %3533 = vst [vmem:[%s4975_s28 + $0x308] sm:$0xff] %v3532_v30  ;;  %v3566_v47 = vld [vmem:[%s4646_s10 + $0x210] sm:$0xff]  ;;  %v3568_v50 = vld [vmem:[%s4646_s10 + $0x218] sm:$0xff] }
 0x1c1   : > { %3535 = vst [vmem:[%s4975_s28 + $0x310] sm:$0xff] %v3534_v31  ;;  %3537 = vst [vmem:[%s4975_s28 + $0x318] sm:$0xff] %v3536_v32  ;;  %v3570_v51 = vld [vmem:[%s4646_s10 + $0x220] sm:$0xff]  ;;  %v3572_v54 = vld [vmem:[%s4646_s10 + $0x228] sm:$0xff] }
 0x1c2   : > { %3539 = vst [vmem:[%s4975_s28 + $0x340] sm:$0xff] %v3538_v36  ;;  %3541 = vst [vmem:[%s4975_s28 + $0x348] sm:$0xff] %v3540_v37  ;;  %v3574_v55 = vld [vmem:[%s4646_s10 + $0x230] sm:$0xff]  ;;  %v3576_v56 = vld [vmem:[%s4646_s10 + $0x238] sm:$0xff] }
 0x1c3   : > { %3543 = vst [vmem:[%s4975_s28 + $0x350] sm:$0xff] %v3542_v40  ;;  %3545 = vst [vmem:[%s4975_s28 + $0x358] sm:$0xff] %v3544_v41  ;;  %v3578_v57 = vld [vmem:[%s4646_s10 + $0x240] sm:$0xff]  ;;  %v3580_v58 = vld [vmem:[%s4646_s10 + $0x248] sm:$0xff] }
 0x1c4   : > { %3547 = vst [vmem:[%s4975_s28 + $0x380] sm:$0xff] %v3546_v42  ;;  %3549 = vst [vmem:[%s4975_s28 + $0x388] sm:$0xff] %v3548_v43  ;;  %v3582_v59 = vld [vmem:[%s4646_s10 + $0x250] sm:$0xff]  ;;  %v3584_v60 = vld [vmem:[%s4646_s10 + $0x258] sm:$0xff] }
 0x1c5   : > { %3551 = vst [vmem:[%s4975_s28 + $0x390] sm:$0xff] %v3550_v34  ;;  %3553 = vst [vmem:[%s4975_s28 + $0x398] sm:$0xff] %v3552_v35  ;;  %v3586_v48 = vld [vmem:[%s4646_s10 + $0x260] sm:$0xff]  ;;  %v3588_v61 = vld [vmem:[%s4646_s10 + $0x268] sm:$0xff] }
 0x1c6   : > { %3555 = vst [vmem:[%s4975_s28 + $0x3c0] sm:$0xff] %v3554_v44  ;;  %3557 = vst [vmem:[%s4975_s28 + $0x3c8] sm:$0xff] %v3556_v38  ;;  %v3590_v62 = vld [vmem:[%s4646_s10 + $0x270] sm:$0xff]  ;;  %v3592_v49 = vld [vmem:[%s4646_s10 + $0x278] sm:$0xff] }
 0x1c7   : > { %3559 = vst [vmem:[%s4975_s28 + $0x3d0] sm:$0xff] %v3558_v39  ;;  %3561 = vst [vmem:[%s4975_s28 + $0x3d8] sm:$0xff] %v3560_v45  ;;  %v3594_v52 = vld [vmem:[%s4646_s10 + $0x280] sm:$0xff]  ;;  %v3596_v3 = vld [vmem:[%s4646_s10 + $0x288] sm:$0xff] }
 0x1c8   : > { %3563 = vst [vmem:[%s4975_s28 + $0x400] sm:$0xff] %v3562_v2  ;;  %3565 = vst [vmem:[%s4975_s28 + $0x408] sm:$0xff] %v3564_v46  ;;  %v3598_v6 = vld [vmem:[%s4646_s10 + $0x290] sm:$0xff]  ;;  %v3600_v53 = vld [vmem:[%s4646_s10 + $0x298] sm:$0xff] }
 0x1c9   : > { %3567 = vst [vmem:[%s4975_s28 + $0x410] sm:$0xff] %v3566_v47  ;;  %3569 = vst [vmem:[%s4975_s28 + $0x418] sm:$0xff] %v3568_v50  ;;  %v3602_v7 = vld [vmem:[%s4646_s10 + $0x2a0] sm:$0xff]  ;;  %v3604_v8 = vld [vmem:[%s4646_s10 + $0x2a8] sm:$0xff] }
 0x1ca   : > { %3571 = vst [vmem:[%s4975_s28 + $0x440] sm:$0xff] %v3570_v51  ;;  %3573 = vst [vmem:[%s4975_s28 + $0x448] sm:$0xff] %v3572_v54  ;;  %v3606_v9 = vld [vmem:[%s4646_s10 + $0x2b0] sm:$0xff]  ;;  %v3608_v10 = vld [vmem:[%s4646_s10 + $0x2b8] sm:$0xff] }
 0x1cb   : > { %3575 = vst [vmem:[%s4975_s28 + $0x450] sm:$0xff] %v3574_v55  ;;  %3577 = vst [vmem:[%s4975_s28 + $0x458] sm:$0xff] %v3576_v56  ;;  %v3610_v11 = vld [vmem:[%s4646_s10 + $0x2c0] sm:$0xff]  ;;  %v3612_v12 = vld [vmem:[%s4646_s10 + $0x2c8] sm:$0xff] }
 0x1cc   : > { %3579 = vst [vmem:[%s4975_s28 + $0x480] sm:$0xff] %v3578_v57  ;;  %3581 = vst [vmem:[%s4975_s28 + $0x488] sm:$0xff] %v3580_v58  ;;  %v3614_v13 = vld [vmem:[%s4646_s10 + $0x2d0] sm:$0xff]  ;;  %v3616_v63 = vld [vmem:[%s4646_s10 + $0x2d8] sm:$0xff] }
 0x1cd   : > { %3583 = vst [vmem:[%s4975_s28 + $0x490] sm:$0xff] %v3582_v59  ;;  %3585 = vst [vmem:[%s4975_s28 + $0x498] sm:$0xff] %v3584_v60  ;;  %v3618_v1 = vld [vmem:[%s4646_s10 + $0x2e0] sm:$0xff]  ;;  %v3620_v14 = vld [vmem:[%s4646_s10 + $0x2e8] sm:$0xff] }
 0x1ce   : > { %3587 = vst [vmem:[%s4975_s28 + $0x4c0] sm:$0xff] %v3586_v48  ;;  %3589 = vst [vmem:[%s4975_s28 + $0x4c8] sm:$0xff] %v3588_v61  ;;  %v3622_v4 = vld [vmem:[%s4646_s10 + $0x2f0] sm:$0xff]  ;;  %v3624_v5 = vld [vmem:[%s4646_s10 + $0x2f8] sm:$0xff] }
 0x1cf   : > { %3591 = vst [vmem:[%s4975_s28 + $0x4d0] sm:$0xff] %v3590_v62  ;;  %3593 = vst [vmem:[%s4975_s28 + $0x4d8] sm:$0xff] %v3592_v49  ;;  %v3626_v17 = vld [vmem:[%s4646_s10 + $0x300] sm:$0xff]  ;;  %v3628_v16 = vld [vmem:[%s4646_s10 + $0x308] sm:$0xff] }
 0x1d0   : > { %3595 = vst [vmem:[%s4975_s28 + $0x500] sm:$0xff] %v3594_v52  ;;  %3597 = vst [vmem:[%s4975_s28 + $0x508] sm:$0xff] %v3596_v3  ;;  %v3630_v20 = vld [vmem:[%s4646_s10 + $0x310] sm:$0xff]  ;;  %v3632_v21 = vld [vmem:[%s4646_s10 + $0x318] sm:$0xff] }
 0x1d1   : > { %3599 = vst [vmem:[%s4975_s28 + $0x510] sm:$0xff] %v3598_v6  ;;  %3601 = vst [vmem:[%s4975_s28 + $0x518] sm:$0xff] %v3600_v53  ;;  %v3634_v22 = vld [vmem:[%s4646_s10 + $0x320] sm:$0xff]  ;;  %v3636_v23 = vld [vmem:[%s4646_s10 + $0x328] sm:$0xff] }
 0x1d2   : > { %3603 = vst [vmem:[%s4975_s28 + $0x540] sm:$0xff] %v3602_v7  ;;  %3605 = vst [vmem:[%s4975_s28 + $0x548] sm:$0xff] %v3604_v8  ;;  %v3638_v24 = vld [vmem:[%s4646_s10 + $0x330] sm:$0xff]  ;;  %v3640_v25 = vld [vmem:[%s4646_s10 + $0x338] sm:$0xff] }
 0x1d3   : > { %3607 = vst [vmem:[%s4975_s28 + $0x550] sm:$0xff] %v3606_v9  ;;  %3609 = vst [vmem:[%s4975_s28 + $0x558] sm:$0xff] %v3608_v10 }
 0x1d4   : > { %3611 = vst [vmem:[%s4975_s28 + $0x580] sm:$0xff] %v3610_v11  ;;  %3613 = vst [vmem:[%s4975_s28 + $0x588] sm:$0xff] %v3612_v12 }
 0x1d5   : > { %3615 = vst [vmem:[%s4975_s28 + $0x590] sm:$0xff] %v3614_v13  ;;  %3617 = vst [vmem:[%s4975_s28 + $0x598] sm:$0xff] %v3616_v63 }
 0x1d6   : > { %3619 = vst [vmem:[%s4975_s28 + $0x5c0] sm:$0xff] %v3618_v1  ;;  %3621 = vst [vmem:[%s4975_s28 + $0x5c8] sm:$0xff] %v3620_v14 }
 0x1d7   : > { %3623 = vst [vmem:[%s4975_s28 + $0x5d0] sm:$0xff] %v3622_v4  ;;  %3625 = vst [vmem:[%s4975_s28 + $0x5d8] sm:$0xff] %v3624_v5 }
 0x1d8   : > { %3627 = vst [vmem:[%s4975_s28 + $0x600] sm:$0xff] %v3626_v17  ;;  %3629 = vst [vmem:[%s4975_s28 + $0x608] sm:$0xff] %v3628_v16 }
 0x1d9   : > { %3631 = vst [vmem:[%s4975_s28 + $0x610] sm:$0xff] %v3630_v20  ;;  %3633 = vst [vmem:[%s4975_s28 + $0x618] sm:$0xff] %v3632_v21 }
 0x1da   : > { %3635 = vst [vmem:[%s4975_s28 + $0x640] sm:$0xff] %v3634_v22  ;;  %3637 = vst [vmem:[%s4975_s28 + $0x648] sm:$0xff] %v3636_v23 }
 0x1db   : > { %3639 = vst [vmem:[%s4975_s28 + $0x650] sm:$0xff] %v3638_v24  ;;  %3641 = vst [vmem:[%s4975_s28 + $0x658] sm:$0xff] %v3640_v25 }
 0x1dc PF: > { %s20_s8 = sadd.s32 1, %s4156_s8   ;;  %s5216_s28 = sld [smem:[#allocation6_spill]] }
 0x1dd   : > { %p17_p9 = scmp.ge.s32.totalorder %s20_s8, 6   ;;  %s5217_s15 = sld [smem:[#allocation7_spill]] }
 0x1de   : > { %s5218_s30 = sld [smem:[#allocation8_spill]]  ;;  %s5219_s24 = smov %s4132_s25 }
 0x1df   : > { %s5220_s25 = smov %s4136_s26  ;;  %s5221_s26 = smov %s4281_s21 }
 0x1e0   : > { %s5222_s27 = smov %s4148_s29  ;;  %19 = sbr.rel (!%p17_p9) target bundleno = 5 (0x5), region = 115 }
 0x1e3   : > { %s5223_s29 = smov %s5217_s15 }
 0x1e7   :  { %3657 = vsyncpa [#allocation3], 1 }
 0x1e8   :  { %3659 = vsyncpa [#allocation3 + $0x1], 1 }

</bundles_post_ra>
